<compile_context>
chip_gen: v7x
topology: tpu7x:2x2x1
jax: 0.10.0
libtpu: 0.0.40
codegen_flags: <defaults>
</compile_context>

<pallas_src>
import jax
import jax.numpy as jnp
from jax.experimental import pallas as pl
from jax.experimental.pallas import tpu as pltpu  # noqa: F401  (kept for TPU-specific tuning hooks)

# ----------------------------- config (small) -------------------------------
VOCAB = 100
SEQ = 8
HIDDEN = 32
HEADS = 2
HEAD_DIM = HIDDEN // HEADS
INTER = 64
LAYERS = 2
SARCASM_LABELS = 2
SENTIMENT_LABELS = 3
LN_EPS = 1e-12
BATCH = 2
LOGIT_PAD = 128            # lane-dense logits slab (both heads + zero padding)


# ------------------------------ kernel helpers ------------------------------
def _layer_norm(x, gamma, beta):
    mean = jnp.mean(x, axis=-1, keepdims=True)
    var = jnp.mean(jnp.square(x - mean), axis=-1, keepdims=True)
    return (x - mean) * jax.lax.rsqrt(var + LN_EPS) * gamma + beta


def _gelu(x):
    # tanh-approx GELU; exact-erf GELU of nn.GELU differs at the ~1e-3 level.
    return 0.5 * x * (1.0 + jnp.tanh(0.7978845608028654 * (x + 0.044715 * x * x * x)))


# --------------------------- fused forward kernel ---------------------------
def fused_bert_kernel(emb_ref, mask_ref, embg_ref, embb_ref,
                      wqkv_ref, bqkv_ref, wo_ref, bo_ref, ln1g_ref, ln1b_ref,
                      w1_ref, b1_ref, w2_ref, b2_ref, ln2g_ref, ln2b_ref,
                      clsw_ref, clsb_ref, out_ref):
    # Embedding LayerNorm (fused into the kernel).
    x = _layer_norm(emb_ref[...], embg_ref[...], embb_ref[...])    # (B*S, H) f32
    mask = mask_ref[...]                                           # (B*S, B*S) additive
    scale = 1.0 / (HEAD_DIM ** 0.5)

    for l in range(LAYERS):                                        # unrolled, LAYERS=2
        # Fused QKV projection: bf16 operands, f32 accumulation on the MXU.
        qkv = (jnp.dot(x.astype(jnp.bfloat16), wqkv_ref[l],
                       preferred_element_type=jnp.float32) + bqkv_ref[l])
        q = qkv[:, 0 * HIDDEN:1 * HIDDEN]
        k = qkv[:, 1 * HIDDEN:2 * HIDDEN]
        v = qkv[:, 2 * HIDDEN:3 * HIDDEN]

        # Multi-head attention over the flattened (B*S) token axis; the
        # block-diagonal `mask` kills cross-batch attention and applies the
        # original attention_mask.  Softmax math stays in f32.
        ctx_heads = []
        for h in range(HEADS):                                     # unrolled, HEADS=2
            lo, hi = h * HEAD_DIM, (h + 1) * HEAD_DIM
            qh = q[:, lo:hi].astype(jnp.bfloat16)
            kh = k[:, lo:hi].astype(jnp.bfloat16)
            vh = v[:, lo:hi].astype(jnp.bfloat16)
            s = jnp.dot(qh, kh.T, preferred_element_type=jnp.float32) * scale + mask
            s = s - jnp.max(s, axis=-1, keepdims=True)
            p = jnp.exp(s)
            p = p / jnp.sum(p, axis=-1, keepdims=True)
            ctx_heads.append(jnp.dot(p.astype(jnp.bfloat16), vh,
                                     preferred_element_type=jnp.float32))
        ctx = jnp.concatenate(ctx_heads, axis=-1)                  # (B*S, H)

        # Single output projection over all heads.
        attn = (jnp.dot(ctx.astype(jnp.bfloat16), wo_ref[l],
                        preferred_element_type=jnp.float32) + bo_ref[l])
        x1 = _layer_norm(x + attn, ln1g_ref[l], ln1b_ref[l])

        # Feed-forward block.
        h1 = _gelu(jnp.dot(x1.astype(jnp.bfloat16), w1_ref[l],
                           preferred_element_type=jnp.float32) + b1_ref[l])
        ffn = (jnp.dot(h1.astype(jnp.bfloat16), w2_ref[l],
                       preferred_element_type=jnp.float32) + b2_ref[l])
        x = _layer_norm(x1 + ffn, ln2g_ref[l], ln2b_ref[l])

    # Both classifier heads at once into a lane-dense (B*S, 128) slab
    # (cols [0:2] = sarcasm, [2:5] = sentiment, rest zero padding).
    out_ref[...] = (jnp.dot(x.astype(jnp.bfloat16), clsw_ref[...],
                            preferred_element_type=jnp.float32) + clsb_ref[...])


# ------------------------------ parameter init ------------------------------
def init_params(key):
    keys = jax.random.split(key, 8 + LAYERS * 8)
    ki = iter(range(len(keys)))
    std = 0.02

    def nrm(shape):
        return std * jax.random.normal(keys[next(ki)], shape, jnp.float32)

    params = {
        "word_emb": nrm((VOCAB, HIDDEN)),
        "pos_emb": nrm((SEQ, HIDDEN)),
        "type_emb": nrm((2, HIDDEN)),
        "emb_ln_g": jnp.ones((1, HIDDEN), jnp.float32),
        "emb_ln_b": jnp.zeros((1, HIDDEN), jnp.float32),
        "sarcasm_w": nrm((HIDDEN, SARCASM_LABELS)),
        "sarcasm_b": jnp.zeros((1, SARCASM_LABELS), jnp.float32),
        "sentiment_w": nrm((HIDDEN, SENTIMENT_LABELS)),
        "sentiment_b": jnp.zeros((1, SENTIMENT_LABELS), jnp.float32),
        "layers": [],
    }
    for _ in range(LAYERS):
        lp = {
            "wq": nrm((HIDDEN, HIDDEN)), "bq": jnp.zeros((1, HIDDEN), jnp.float32),
            "wk": nrm((HIDDEN, HIDDEN)), "bk": jnp.zeros((1, HIDDEN), jnp.float32),
            "wv": nrm((HIDDEN, HIDDEN)), "bv": jnp.zeros((1, HIDDEN), jnp.float32),
            "wo": nrm((HIDDEN, HIDDEN)), "bo": jnp.zeros((1, HIDDEN), jnp.float32),
            "ln1g": jnp.ones((1, HIDDEN), jnp.float32),
            "ln1b": jnp.zeros((1, HIDDEN), jnp.float32),
            "w1": nrm((HIDDEN, INTER)), "b1": jnp.zeros((1, INTER), jnp.float32),
            "w2": nrm((INTER, HIDDEN)), "b2": jnp.zeros((1, HIDDEN), jnp.float32),
            "ln2g": jnp.ones((1, HIDDEN), jnp.float32),
            "ln2b": jnp.zeros((1, HIDDEN), jnp.float32),
        }
        params["layers"].append(lp)
    return params


def prepare_fused_params(params):
    """Stack per-layer weights with a leading LAYERS axis, fuse QKV, pack both
    classifier heads into one lane-dense (HIDDEN, 128) matrix, cast matmul
    weights to bf16 (LN params / biases stay f32)."""
    def stack(name):
        return jnp.stack([lp[name] for lp in params["layers"]])

    wqkv = jnp.concatenate([stack("wq"), stack("wk"), stack("wv")], axis=-1)
    bqkv = jnp.concatenate([stack("bq"), stack("bk"), stack("bv")], axis=-1)

    clsw = jnp.zeros((HIDDEN, LOGIT_PAD), jnp.float32)
    clsw = clsw.at[:, :SARCASM_LABELS].set(params["sarcasm_w"])
    clsw = clsw.at[:, SARCASM_LABELS:SARCASM_LABELS + SENTIMENT_LABELS].set(
        params["sentiment_w"])
    clsb = jnp.zeros((1, LOGIT_PAD), jnp.float32)
    clsb = clsb.at[:, :SARCASM_LABELS].set(params["sarcasm_b"])
    clsb = clsb.at[:, SARCASM_LABELS:SARCASM_LABELS + SENTIMENT_LABELS].set(
        params["sentiment_b"])

    return {
        "word_emb": params["word_emb"], "pos_emb": params["pos_emb"],
        "type_emb": params["type_emb"],
        "emb_ln_g": params["emb_ln_g"], "emb_ln_b": params["emb_ln_b"],
        "wqkv": wqkv.astype(jnp.bfloat16), "bqkv": bqkv,
        "wo": stack("wo").astype(jnp.bfloat16), "bo": stack("bo"),
        "ln1g": stack("ln1g"), "ln1b": stack("ln1b"),
        "w1": stack("w1").astype(jnp.bfloat16), "b1": stack("b1"),
        "w2": stack("w2").astype(jnp.bfloat16), "b2": stack("b2"),
        "ln2g": stack("ln2g"), "ln2b": stack("ln2b"),
        "clsw": clsw.astype(jnp.bfloat16), "clsb": clsb,
    }


# ------------------------------- forward pass --------------------------------
@jax.jit
def fused_logits(fp, input_ids, attention_mask, token_type_ids):
    """Runs the full backbone + BOTH classifier heads once.
    Returns padded CLS logits of shape (B, 128)."""
    B, S = input_ids.shape

    # Embedding gathers stay as plain-JAX glue (table gather at this size).
    emb = (fp["word_emb"][input_ids]
           + fp["pos_emb"][None, :, :]
           + fp["type_emb"][token_type_ids])
    emb = emb.reshape(B * S, HIDDEN).astype(jnp.float32)

    # Block-diagonal additive attention mask over the flattened token axis:
    # allowed[b*S+q, b2*S+k] = (b == b2) and attention_mask[b2, k]
    att = attention_mask.astype(jnp.float32)                        # (B, S)
    same_batch = jnp.eye(B, dtype=jnp.float32)                      # (B, B)
    allowed = same_batch[:, None, :, None] * att[None, None, :, :]  # (B, 1, B, S)
    allowed = jnp.broadcast_to(allowed, (B, S, B, S)).reshape(B * S, B * S)
    add_mask = (1.0 - allowed) * -1e9

    token_logits = pl.pallas_call(
        fused_bert_kernel,
        out_shape=jax.ShapeDtypeStruct((B * S, LOGIT_PAD), jnp.float32),
    )(emb, add_mask, fp["emb_ln_g"], fp["emb_ln_b"],
      fp["wqkv"], fp["bqkv"], fp["wo"], fp["bo"], fp["ln1g"], fp["ln1b"],
      fp["w1"], fp["b1"], fp["w2"], fp["b2"], fp["ln2g"], fp["ln2b"],
      fp["clsw"], fp["clsb"])

    # CLS token logits (position 0 of each batch element), both heads + padding.
    return token_logits.reshape(B, S, LOGIT_PAD)[:, 0, :]           # (B, 128)


def slice_task(cls_logits_padded, task):
    if task == "sarcasm":
        return cls_logits_padded[:, :SARCASM_LABELS]
    elif task == "sentiment":
        return cls_logits_padded[:, SARCASM_LABELS:SARCASM_LABELS + SENTIMENT_LABELS]
    raise ValueError("Task should be 'sarcasm' or 'sentiment'")


def multi_task_bert_forward(fused_params, input_ids, attention_mask,
                            token_type_ids, task):
    """API-compatible with the PyTorch module's forward(..., task)."""
    cls_logits_padded = fused_logits(fused_params, input_ids,
                                     attention_mask, token_type_ids)
    return slice_task(cls_logits_padded, task)


# ----------------------------------- main ------------------------------------
if __name__ == "__main__":
    key = jax.random.PRNGKey(0)
    pkey, ikey = jax.random.split(key, 2)

    params = init_params(pkey)
    fp = prepare_fused_params(params)

    input_ids = jax.random.randint(ikey, (BATCH, SEQ), 0, VOCAB, dtype=jnp.int32)
    attention_mask = jnp.ones((BATCH, SEQ), dtype=jnp.int32)
    token_type_ids = jnp.zeros((BATCH, SEQ), dtype=jnp.int32)

    # Backbone runs ONCE; both task heads come out of the same fused kernel.
    cls_logits_padded = fused_logits(fp, input_ids, attention_mask, token_type_ids)
    sarcasm_logits = slice_task(cls_logits_padded, "sarcasm")
    sentiment_logits = slice_task(cls_logits_padded, "sentiment")

    # Per-task API path (matches the nn.Module forward signature).
    sarcasm_logits_api = multi_task_bert_forward(
        fp, input_ids, attention_mask, token_type_ids, "sarcasm")

    jax.block_until_ready(sarcasm_logits)
    jax.block_until_ready(sentiment_logits)
    jax.block_until_ready(sarcasm_logits_api)

    assert sarcasm_logits.shape == (BATCH, SARCASM_LABELS)
    assert sentiment_logits.shape == (BATCH, SENTIMENT_LABELS)
    assert bool(jnp.allclose(sarcasm_logits, sarcasm_logits_api))
    print("KERNEL_OK")
</pallas_src>

<mosaic_0001>
module attributes {stable_mosaic.version = 11 : i64} {
  func.func @fused_bert_kernel(%arg0: memref<16x32xf32, #tpu.memory_space<vmem>>, %arg1: memref<16x16xf32, #tpu.memory_space<vmem>>, %arg2: memref<1x32xf32, #tpu.memory_space<vmem>>, %arg3: memref<1x32xf32, #tpu.memory_space<vmem>>, %arg4: memref<2x32x96xbf16, #tpu.memory_space<vmem>>, %arg5: memref<2x1x96xf32, #tpu.memory_space<vmem>>, %arg6: memref<2x32x32xbf16, #tpu.memory_space<vmem>>, %arg7: memref<2x1x32xf32, #tpu.memory_space<vmem>>, %arg8: memref<2x1x32xf32, #tpu.memory_space<vmem>>, %arg9: memref<2x1x32xf32, #tpu.memory_space<vmem>>, %arg10: memref<2x32x64xbf16, #tpu.memory_space<vmem>>, %arg11: memref<2x1x64xf32, #tpu.memory_space<vmem>>, %arg12: memref<2x64x32xbf16, #tpu.memory_space<vmem>>, %arg13: memref<2x1x32xf32, #tpu.memory_space<vmem>>, %arg14: memref<2x1x32xf32, #tpu.memory_space<vmem>>, %arg15: memref<2x1x32xf32, #tpu.memory_space<vmem>>, %arg16: memref<32x128xbf16, #tpu.memory_space<vmem>>, %arg17: memref<1x128xf32, #tpu.memory_space<vmem>>, %arg18: memref<16x128xf32, #tpu.memory_space<vmem>>) attributes {dimension_semantics = [], scalar_prefetch = 0 : i64, scratch_operands = 0 : i64, tpu.core_type = #tpu.core_type<tc>} {
    %c0 = arith.constant 0 : index
    %c0_0 = arith.constant 0 : index
    %0 = vector.load %arg0[%c0, %c0_0] : memref<16x32xf32, #tpu.memory_space<vmem>>, vector<16x32xf32>
    %c0_1 = arith.constant 0 : index
    %c0_2 = arith.constant 0 : index
    %1 = vector.load %arg2[%c0_1, %c0_2] : memref<1x32xf32, #tpu.memory_space<vmem>>, vector<1x32xf32>
    %c0_3 = arith.constant 0 : index
    %c0_4 = arith.constant 0 : index
    %2 = vector.load %arg3[%c0_3, %c0_4] : memref<1x32xf32, #tpu.memory_space<vmem>>, vector<1x32xf32>
    %cst = arith.constant dense<0.000000e+00> : vector<16xf32>
    %3 = vector.multi_reduction <add>, %0, %cst [1] : vector<16x32xf32> to vector<16xf32>
    %4 = vector.shape_cast %3 : vector<16xf32> to vector<16x1xf32>
    %cst_5 = arith.constant 3.200000e+01 : f32
    %5 = vector.broadcast %cst_5 : f32 to vector<16x1xf32>
    %6 = arith.divf %4, %5 : vector<16x1xf32>
    %7 = vector.broadcast %6 : vector<16x1xf32> to vector<16x32xf32>
    %8 = arith.subf %0, %7 : vector<16x32xf32>
    %9 = arith.mulf %8, %8 : vector<16x32xf32>
    %cst_6 = arith.constant dense<0.000000e+00> : vector<16xf32>
    %10 = vector.multi_reduction <add>, %9, %cst_6 [1] : vector<16x32xf32> to vector<16xf32>
    %11 = vector.shape_cast %10 : vector<16xf32> to vector<16x1xf32>
    %cst_7 = arith.constant 3.200000e+01 : f32
    %12 = vector.broadcast %cst_7 : f32 to vector<16x1xf32>
    %13 = arith.divf %11, %12 : vector<16x1xf32>
    %14 = vector.broadcast %6 : vector<16x1xf32> to vector<16x32xf32>
    %15 = arith.subf %0, %14 : vector<16x32xf32>
    %cst_8 = arith.constant 9.99999996E-13 : f32
    %16 = vector.broadcast %cst_8 : f32 to vector<16x1xf32>
    %17 = arith.addf %13, %16 : vector<16x1xf32>
    %18 = math.rsqrt %17 : vector<16x1xf32>
    %19 = vector.broadcast %18 : vector<16x1xf32> to vector<16x32xf32>
    %20 = arith.mulf %15, %19 : vector<16x32xf32>
    %21 = vector.broadcast %1 : vector<1x32xf32> to vector<16x32xf32>
    %22 = arith.mulf %20, %21 : vector<16x32xf32>
    %23 = vector.broadcast %2 : vector<1x32xf32> to vector<16x32xf32>
    %24 = arith.addf %22, %23 : vector<16x32xf32>
    %c0_9 = arith.constant 0 : index
    %c0_10 = arith.constant 0 : index
    %25 = vector.load %arg1[%c0_9, %c0_10] : memref<16x16xf32, #tpu.memory_space<vmem>>, vector<16x16xf32>
    %26 = arith.truncf %24 : vector<16x32xf32> to vector<16x32xbf16>
    %c0_11 = arith.constant 0 : index
    %c0_12 = arith.constant 0 : index
    %c0_13 = arith.constant 0 : index
    %27 = vector.load %arg4[%c0_11, %c0_12, %c0_13] : memref<2x32x96xbf16, #tpu.memory_space<vmem>>, vector<1x32x96xbf16>
    %28 = vector.shape_cast %27 : vector<1x32x96xbf16> to vector<32x96xbf16>
    %cst_14 = arith.constant dense<0.000000e+00> : vector<16x96xf32>
    %29 = tpu.matmul %26, %28, %cst_14 {dimension_numbers = #tpu.dot_dimension_numbers<[1], [0], [0], [1], [0, 0, 1, 1], [], []>} : vector<16x32xbf16>, vector<32x96xbf16>, vector<16x96xf32> -> vector<16x96xf32>
    %c0_15 = arith.constant 0 : index
    %c0_16 = arith.constant 0 : index
    %c0_17 = arith.constant 0 : index
    %30 = vector.load %arg5[%c0_15, %c0_16, %c0_17] : memref<2x1x96xf32, #tpu.memory_space<vmem>>, vector<1x1x96xf32>
    %31 = vector.shape_cast %30 : vector<1x1x96xf32> to vector<1x96xf32>
    %32 = vector.broadcast %31 : vector<1x96xf32> to vector<16x96xf32>
    %33 = arith.addf %29, %32 : vector<16x96xf32>
    %34 = vector.extract_strided_slice %33 {offsets = [0, 0], sizes = [16, 32], strides = [1, 1]} : vector<16x96xf32> to vector<16x32xf32>
    %35 = vector.extract_strided_slice %33 {offsets = [0, 32], sizes = [16, 32], strides = [1, 1]} : vector<16x96xf32> to vector<16x32xf32>
    %36 = vector.extract_strided_slice %33 {offsets = [0, 64], sizes = [16, 32], strides = [1, 1]} : vector<16x96xf32> to vector<16x32xf32>
    %37 = vector.extract_strided_slice %34 {offsets = [0, 0], sizes = [16, 16], strides = [1, 1]} : vector<16x32xf32> to vector<16x16xf32>
    %38 = arith.truncf %37 : vector<16x16xf32> to vector<16x16xbf16>
    %39 = vector.extract_strided_slice %35 {offsets = [0, 0], sizes = [16, 16], strides = [1, 1]} : vector<16x32xf32> to vector<16x16xf32>
    %40 = arith.truncf %39 : vector<16x16xf32> to vector<16x16xbf16>
    %41 = vector.extract_strided_slice %36 {offsets = [0, 0], sizes = [16, 16], strides = [1, 1]} : vector<16x32xf32> to vector<16x16xf32>
    %42 = arith.truncf %41 : vector<16x16xf32> to vector<16x16xbf16>
    %43 = tpu.transpose %40, [1, 0] : vector<16x16xbf16> -> vector<16x16xbf16>
    %cst_18 = arith.constant dense<0.000000e+00> : vector<16x16xf32>
    %44 = tpu.matmul %38, %43, %cst_18 {dimension_numbers = #tpu.dot_dimension_numbers<[1], [0], [0], [1], [0, 0, 1, 1], [], []>} : vector<16x16xbf16>, vector<16x16xbf16>, vector<16x16xf32> -> vector<16x16xf32>
    %cst_19 = arith.constant 2.500000e-01 : f32
    %45 = vector.broadcast %cst_19 : f32 to vector<16x16xf32>
    %46 = arith.mulf %44, %45 : vector<16x16xf32>
    %47 = arith.addf %46, %25 : vector<16x16xf32>
    %cst_20 = arith.constant dense<0xFF800000> : vector<16xf32>
    %48 = vector.multi_reduction <maximumf>, %47, %cst_20 [1] : vector<16x16xf32> to vector<16xf32>
    %49 = vector.shape_cast %48 : vector<16xf32> to vector<16x1xf32>
    %50 = vector.broadcast %49 : vector<16x1xf32> to vector<16x16xf32>
    %51 = arith.subf %47, %50 : vector<16x16xf32>
    %52 = math.exp %51 : vector<16x16xf32>
    %cst_21 = arith.constant dense<0.000000e+00> : vector<16xf32>
    %53 = vector.multi_reduction <add>, %52, %cst_21 [1] : vector<16x16xf32> to vector<16xf32>
    %54 = vector.shape_cast %53 : vector<16xf32> to vector<16x1xf32>
    %55 = vector.broadcast %54 : vector<16x1xf32> to vector<16x16xf32>
    %56 = arith.divf %52, %55 : vector<16x16xf32>
    %57 = arith.truncf %56 : vector<16x16xf32> to vector<16x16xbf16>
    %cst_22 = arith.constant dense<0.000000e+00> : vector<16x16xf32>
    %58 = tpu.matmul %57, %42, %cst_22 {dimension_numbers = #tpu.dot_dimension_numbers<[1], [0], [0], [1], [0, 0, 1, 1], [], []>} : vector<16x16xbf16>, vector<16x16xbf16>, vector<16x16xf32> -> vector<16x16xf32>
    %59 = vector.extract_strided_slice %34 {offsets = [0, 16], sizes = [16, 16], strides = [1, 1]} : vector<16x32xf32> to vector<16x16xf32>
    %60 = arith.truncf %59 : vector<16x16xf32> to vector<16x16xbf16>
    %61 = vector.extract_strided_slice %35 {offsets = [0, 16], sizes = [16, 16], strides = [1, 1]} : vector<16x32xf32> to vector<16x16xf32>
    %62 = arith.truncf %61 : vector<16x16xf32> to vector<16x16xbf16>
    %63 = vector.extract_strided_slice %36 {offsets = [0, 16], sizes = [16, 16], strides = [1, 1]} : vector<16x32xf32> to vector<16x16xf32>
    %64 = arith.truncf %63 : vector<16x16xf32> to vector<16x16xbf16>
    %65 = tpu.transpose %62, [1, 0] : vector<16x16xbf16> -> vector<16x16xbf16>
    %cst_23 = arith.constant dense<0.000000e+00> : vector<16x16xf32>
    %66 = tpu.matmul %60, %65, %cst_23 {dimension_numbers = #tpu.dot_dimension_numbers<[1], [0], [0], [1], [0, 0, 1, 1], [], []>} : vector<16x16xbf16>, vector<16x16xbf16>, vector<16x16xf32> -> vector<16x16xf32>
    %cst_24 = arith.constant 2.500000e-01 : f32
    %67 = vector.broadcast %cst_24 : f32 to vector<16x16xf32>
    %68 = arith.mulf %66, %67 : vector<16x16xf32>
    %69 = arith.addf %68, %25 : vector<16x16xf32>
    %cst_25 = arith.constant dense<0xFF800000> : vector<16xf32>
    %70 = vector.multi_reduction <maximumf>, %69, %cst_25 [1] : vector<16x16xf32> to vector<16xf32>
    %71 = vector.shape_cast %70 : vector<16xf32> to vector<16x1xf32>
    %72 = vector.broadcast %71 : vector<16x1xf32> to vector<16x16xf32>
    %73 = arith.subf %69, %72 : vector<16x16xf32>
    %74 = math.exp %73 : vector<16x16xf32>
    %cst_26 = arith.constant dense<0.000000e+00> : vector<16xf32>
    %75 = vector.multi_reduction <add>, %74, %cst_26 [1] : vector<16x16xf32> to vector<16xf32>
    %76 = vector.shape_cast %75 : vector<16xf32> to vector<16x1xf32>
    %77 = vector.broadcast %76 : vector<16x1xf32> to vector<16x16xf32>
    %78 = arith.divf %74, %77 : vector<16x16xf32>
    %79 = arith.truncf %78 : vector<16x16xf32> to vector<16x16xbf16>
    %cst_27 = arith.constant dense<0.000000e+00> : vector<16x16xf32>
    %80 = tpu.matmul %79, %64, %cst_27 {dimension_numbers = #tpu.dot_dimension_numbers<[1], [0], [0], [1], [0, 0, 1, 1], [], []>} : vector<16x16xbf16>, vector<16x16xbf16>, vector<16x16xf32> -> vector<16x16xf32>
    %81 = tpu.concatenate %58, %80 in 1 : vector<16x16xf32>, vector<16x16xf32> -> vector<16x32xf32>
    %82 = arith.truncf %81 : vector<16x32xf32> to vector<16x32xbf16>
    %c0_28 = arith.constant 0 : index
    %c0_29 = arith.constant 0 : index
    %c0_30 = arith.constant 0 : index
    %83 = vector.load %arg6[%c0_28, %c0_29, %c0_30] : memref<2x32x32xbf16, #tpu.memory_space<vmem>>, vector<1x32x32xbf16>
    %84 = vector.shape_cast %83 : vector<1x32x32xbf16> to vector<32x32xbf16>
    %cst_31 = arith.constant dense<0.000000e+00> : vector<16x32xf32>
    %85 = tpu.matmul %82, %84, %cst_31 {dimension_numbers = #tpu.dot_dimension_numbers<[1], [0], [0], [1], [0, 0, 1, 1], [], []>} : vector<16x32xbf16>, vector<32x32xbf16>, vector<16x32xf32> -> vector<16x32xf32>
    %c0_32 = arith.constant 0 : index
    %c0_33 = arith.constant 0 : index
    %c0_34 = arith.constant 0 : index
    %86 = vector.load %arg7[%c0_32, %c0_33, %c0_34] : memref<2x1x32xf32, #tpu.memory_space<vmem>>, vector<1x1x32xf32>
    %87 = vector.shape_cast %86 : vector<1x1x32xf32> to vector<1x32xf32>
    %88 = vector.broadcast %87 : vector<1x32xf32> to vector<16x32xf32>
    %89 = arith.addf %85, %88 : vector<16x32xf32>
    %90 = arith.addf %24, %89 : vector<16x32xf32>
    %c0_35 = arith.constant 0 : index
    %c0_36 = arith.constant 0 : index
    %c0_37 = arith.constant 0 : index
    %91 = vector.load %arg8[%c0_35, %c0_36, %c0_37] : memref<2x1x32xf32, #tpu.memory_space<vmem>>, vector<1x1x32xf32>
    %92 = vector.shape_cast %91 : vector<1x1x32xf32> to vector<1x32xf32>
    %c0_38 = arith.constant 0 : index
    %c0_39 = arith.constant 0 : index
    %c0_40 = arith.constant 0 : index
    %93 = vector.load %arg9[%c0_38, %c0_39, %c0_40] : memref<2x1x32xf32, #tpu.memory_space<vmem>>, vector<1x1x32xf32>
    %94 = vector.shape_cast %93 : vector<1x1x32xf32> to vector<1x32xf32>
    %cst_41 = arith.constant dense<0.000000e+00> : vector<16xf32>
    %95 = vector.multi_reduction <add>, %90, %cst_41 [1] : vector<16x32xf32> to vector<16xf32>
    %96 = vector.shape_cast %95 : vector<16xf32> to vector<16x1xf32>
    %cst_42 = arith.constant 3.200000e+01 : f32
    %97 = vector.broadcast %cst_42 : f32 to vector<16x1xf32>
    %98 = arith.divf %96, %97 : vector<16x1xf32>
    %99 = vector.broadcast %98 : vector<16x1xf32> to vector<16x32xf32>
    %100 = arith.subf %90, %99 : vector<16x32xf32>
    %101 = arith.mulf %100, %100 : vector<16x32xf32>
    %cst_43 = arith.constant dense<0.000000e+00> : vector<16xf32>
    %102 = vector.multi_reduction <add>, %101, %cst_43 [1] : vector<16x32xf32> to vector<16xf32>
    %103 = vector.shape_cast %102 : vector<16xf32> to vector<16x1xf32>
    %cst_44 = arith.constant 3.200000e+01 : f32
    %104 = vector.broadcast %cst_44 : f32 to vector<16x1xf32>
    %105 = arith.divf %103, %104 : vector<16x1xf32>
    %106 = vector.broadcast %98 : vector<16x1xf32> to vector<16x32xf32>
    %107 = arith.subf %90, %106 : vector<16x32xf32>
    %cst_45 = arith.constant 9.99999996E-13 : f32
    %108 = vector.broadcast %cst_45 : f32 to vector<16x1xf32>
    %109 = arith.addf %105, %108 : vector<16x1xf32>
    %110 = math.rsqrt %109 : vector<16x1xf32>
    %111 = vector.broadcast %110 : vector<16x1xf32> to vector<16x32xf32>
    %112 = arith.mulf %107, %111 : vector<16x32xf32>
    %113 = vector.broadcast %92 : vector<1x32xf32> to vector<16x32xf32>
    %114 = arith.mulf %112, %113 : vector<16x32xf32>
    %115 = vector.broadcast %94 : vector<1x32xf32> to vector<16x32xf32>
    %116 = arith.addf %114, %115 : vector<16x32xf32>
    %117 = arith.truncf %116 : vector<16x32xf32> to vector<16x32xbf16>
    %c0_46 = arith.constant 0 : index
    %c0_47 = arith.constant 0 : index
    %c0_48 = arith.constant 0 : index
    %118 = vector.load %arg10[%c0_46, %c0_47, %c0_48] : memref<2x32x64xbf16, #tpu.memory_space<vmem>>, vector<1x32x64xbf16>
    %119 = vector.shape_cast %118 : vector<1x32x64xbf16> to vector<32x64xbf16>
    %cst_49 = arith.constant dense<0.000000e+00> : vector<16x64xf32>
    %120 = tpu.matmul %117, %119, %cst_49 {dimension_numbers = #tpu.dot_dimension_numbers<[1], [0], [0], [1], [0, 0, 1, 1], [], []>} : vector<16x32xbf16>, vector<32x64xbf16>, vector<16x64xf32> -> vector<16x64xf32>
    %c0_50 = arith.constant 0 : index
    %c0_51 = arith.constant 0 : index
    %c0_52 = arith.constant 0 : index
    %121 = vector.load %arg11[%c0_50, %c0_51, %c0_52] : memref<2x1x64xf32, #tpu.memory_space<vmem>>, vector<1x1x64xf32>
    %122 = vector.shape_cast %121 : vector<1x1x64xf32> to vector<1x64xf32>
    %123 = vector.broadcast %122 : vector<1x64xf32> to vector<16x64xf32>
    %124 = arith.addf %120, %123 : vector<16x64xf32>
    %cst_53 = arith.constant 5.000000e-01 : f32
    %125 = vector.broadcast %cst_53 : f32 to vector<16x64xf32>
    %126 = arith.mulf %125, %124 : vector<16x64xf32>
    %cst_54 = arith.constant 4.471500e-02 : f32
    %127 = vector.broadcast %cst_54 : f32 to vector<16x64xf32>
    %128 = arith.mulf %127, %124 : vector<16x64xf32>
    %129 = arith.mulf %128, %124 : vector<16x64xf32>
    %130 = arith.mulf %129, %124 : vector<16x64xf32>
    %131 = arith.addf %124, %130 : vector<16x64xf32>
    %cst_55 = arith.constant 0.797884583 : f32
    %132 = vector.broadcast %cst_55 : f32 to vector<16x64xf32>
    %133 = arith.mulf %132, %131 : vector<16x64xf32>
    %134 = math.tanh %133 : vector<16x64xf32>
    %cst_56 = arith.constant 1.000000e+00 : f32
    %135 = vector.broadcast %cst_56 : f32 to vector<16x64xf32>
    %136 = arith.addf %135, %134 : vector<16x64xf32>
    %137 = arith.mulf %126, %136 : vector<16x64xf32>
    %138 = arith.truncf %137 : vector<16x64xf32> to vector<16x64xbf16>
    %c0_57 = arith.constant 0 : index
    %c0_58 = arith.constant 0 : index
    %c0_59 = arith.constant 0 : index
    %139 = vector.load %arg12[%c0_57, %c0_58, %c0_59] : memref<2x64x32xbf16, #tpu.memory_space<vmem>>, vector<1x64x32xbf16>
    %140 = vector.shape_cast %139 : vector<1x64x32xbf16> to vector<64x32xbf16>
    %cst_60 = arith.constant dense<0.000000e+00> : vector<16x32xf32>
    %141 = tpu.matmul %138, %140, %cst_60 {dimension_numbers = #tpu.dot_dimension_numbers<[1], [0], [0], [1], [0, 0, 1, 1], [], []>} : vector<16x64xbf16>, vector<64x32xbf16>, vector<16x32xf32> -> vector<16x32xf32>
    %c0_61 = arith.constant 0 : index
    %c0_62 = arith.constant 0 : index
    %c0_63 = arith.constant 0 : index
    %142 = vector.load %arg13[%c0_61, %c0_62, %c0_63] : memref<2x1x32xf32, #tpu.memory_space<vmem>>, vector<1x1x32xf32>
    %143 = vector.shape_cast %142 : vector<1x1x32xf32> to vector<1x32xf32>
    %144 = vector.broadcast %143 : vector<1x32xf32> to vector<16x32xf32>
    %145 = arith.addf %141, %144 : vector<16x32xf32>
    %146 = arith.addf %116, %145 : vector<16x32xf32>
    %c0_64 = arith.constant 0 : index
    %c0_65 = arith.constant 0 : index
    %c0_66 = arith.constant 0 : index
    %147 = vector.load %arg14[%c0_64, %c0_65, %c0_66] : memref<2x1x32xf32, #tpu.memory_space<vmem>>, vector<1x1x32xf32>
    %148 = vector.shape_cast %147 : vector<1x1x32xf32> to vector<1x32xf32>
    %c0_67 = arith.constant 0 : index
    %c0_68 = arith.constant 0 : index
    %c0_69 = arith.constant 0 : index
    %149 = vector.load %arg15[%c0_67, %c0_68, %c0_69] : memref<2x1x32xf32, #tpu.memory_space<vmem>>, vector<1x1x32xf32>
    %150 = vector.shape_cast %149 : vector<1x1x32xf32> to vector<1x32xf32>
    %cst_70 = arith.constant dense<0.000000e+00> : vector<16xf32>
    %151 = vector.multi_reduction <add>, %146, %cst_70 [1] : vector<16x32xf32> to vector<16xf32>
    %152 = vector.shape_cast %151 : vector<16xf32> to vector<16x1xf32>
    %cst_71 = arith.constant 3.200000e+01 : f32
    %153 = vector.broadcast %cst_71 : f32 to vector<16x1xf32>
    %154 = arith.divf %152, %153 : vector<16x1xf32>
    %155 = vector.broadcast %154 : vector<16x1xf32> to vector<16x32xf32>
    %156 = arith.subf %146, %155 : vector<16x32xf32>
    %157 = arith.mulf %156, %156 : vector<16x32xf32>
    %cst_72 = arith.constant dense<0.000000e+00> : vector<16xf32>
    %158 = vector.multi_reduction <add>, %157, %cst_72 [1] : vector<16x32xf32> to vector<16xf32>
    %159 = vector.shape_cast %158 : vector<16xf32> to vector<16x1xf32>
    %cst_73 = arith.constant 3.200000e+01 : f32
    %160 = vector.broadcast %cst_73 : f32 to vector<16x1xf32>
    %161 = arith.divf %159, %160 : vector<16x1xf32>
    %162 = vector.broadcast %154 : vector<16x1xf32> to vector<16x32xf32>
    %163 = arith.subf %146, %162 : vector<16x32xf32>
    %cst_74 = arith.constant 9.99999996E-13 : f32
    %164 = vector.broadcast %cst_74 : f32 to vector<16x1xf32>
    %165 = arith.addf %161, %164 : vector<16x1xf32>
    %166 = math.rsqrt %165 : vector<16x1xf32>
    %167 = vector.broadcast %166 : vector<16x1xf32> to vector<16x32xf32>
    %168 = arith.mulf %163, %167 : vector<16x32xf32>
    %169 = vector.broadcast %148 : vector<1x32xf32> to vector<16x32xf32>
    %170 = arith.mulf %168, %169 : vector<16x32xf32>
    %171 = vector.broadcast %150 : vector<1x32xf32> to vector<16x32xf32>
    %172 = arith.addf %170, %171 : vector<16x32xf32>
    %173 = arith.truncf %172 : vector<16x32xf32> to vector<16x32xbf16>
    %c1 = arith.constant 1 : index
    %c0_75 = arith.constant 0 : index
    %c0_76 = arith.constant 0 : index
    %174 = vector.load %arg4[%c1, %c0_75, %c0_76] : memref<2x32x96xbf16, #tpu.memory_space<vmem>>, vector<1x32x96xbf16>
    %175 = vector.shape_cast %174 : vector<1x32x96xbf16> to vector<32x96xbf16>
    %cst_77 = arith.constant dense<0.000000e+00> : vector<16x96xf32>
    %176 = tpu.matmul %173, %175, %cst_77 {dimension_numbers = #tpu.dot_dimension_numbers<[1], [0], [0], [1], [0, 0, 1, 1], [], []>} : vector<16x32xbf16>, vector<32x96xbf16>, vector<16x96xf32> -> vector<16x96xf32>
    %c1_78 = arith.constant 1 : index
    %c0_79 = arith.constant 0 : index
    %c0_80 = arith.constant 0 : index
    %177 = vector.load %arg5[%c1_78, %c0_79, %c0_80] : memref<2x1x96xf32, #tpu.memory_space<vmem>>, vector<1x1x96xf32>
    %178 = vector.shape_cast %177 : vector<1x1x96xf32> to vector<1x96xf32>
    %179 = vector.broadcast %178 : vector<1x96xf32> to vector<16x96xf32>
    %180 = arith.addf %176, %179 : vector<16x96xf32>
    %181 = vector.extract_strided_slice %180 {offsets = [0, 0], sizes = [16, 32], strides = [1, 1]} : vector<16x96xf32> to vector<16x32xf32>
    %182 = vector.extract_strided_slice %180 {offsets = [0, 32], sizes = [16, 32], strides = [1, 1]} : vector<16x96xf32> to vector<16x32xf32>
    %183 = vector.extract_strided_slice %180 {offsets = [0, 64], sizes = [16, 32], strides = [1, 1]} : vector<16x96xf32> to vector<16x32xf32>
    %184 = vector.extract_strided_slice %181 {offsets = [0, 0], sizes = [16, 16], strides = [1, 1]} : vector<16x32xf32> to vector<16x16xf32>
    %185 = arith.truncf %184 : vector<16x16xf32> to vector<16x16xbf16>
    %186 = vector.extract_strided_slice %182 {offsets = [0, 0], sizes = [16, 16], strides = [1, 1]} : vector<16x32xf32> to vector<16x16xf32>
    %187 = arith.truncf %186 : vector<16x16xf32> to vector<16x16xbf16>
    %188 = vector.extract_strided_slice %183 {offsets = [0, 0], sizes = [16, 16], strides = [1, 1]} : vector<16x32xf32> to vector<16x16xf32>
    %189 = arith.truncf %188 : vector<16x16xf32> to vector<16x16xbf16>
    %190 = tpu.transpose %187, [1, 0] : vector<16x16xbf16> -> vector<16x16xbf16>
    %cst_81 = arith.constant dense<0.000000e+00> : vector<16x16xf32>
    %191 = tpu.matmul %185, %190, %cst_81 {dimension_numbers = #tpu.dot_dimension_numbers<[1], [0], [0], [1], [0, 0, 1, 1], [], []>} : vector<16x16xbf16>, vector<16x16xbf16>, vector<16x16xf32> -> vector<16x16xf32>
    %cst_82 = arith.constant 2.500000e-01 : f32
    %192 = vector.broadcast %cst_82 : f32 to vector<16x16xf32>
    %193 = arith.mulf %191, %192 : vector<16x16xf32>
    %194 = arith.addf %193, %25 : vector<16x16xf32>
    %cst_83 = arith.constant dense<0xFF800000> : vector<16xf32>
    %195 = vector.multi_reduction <maximumf>, %194, %cst_83 [1] : vector<16x16xf32> to vector<16xf32>
    %196 = vector.shape_cast %195 : vector<16xf32> to vector<16x1xf32>
    %197 = vector.broadcast %196 : vector<16x1xf32> to vector<16x16xf32>
    %198 = arith.subf %194, %197 : vector<16x16xf32>
    %199 = math.exp %198 : vector<16x16xf32>
    %cst_84 = arith.constant dense<0.000000e+00> : vector<16xf32>
    %200 = vector.multi_reduction <add>, %199, %cst_84 [1] : vector<16x16xf32> to vector<16xf32>
    %201 = vector.shape_cast %200 : vector<16xf32> to vector<16x1xf32>
    %202 = vector.broadcast %201 : vector<16x1xf32> to vector<16x16xf32>
    %203 = arith.divf %199, %202 : vector<16x16xf32>
    %204 = arith.truncf %203 : vector<16x16xf32> to vector<16x16xbf16>
    %cst_85 = arith.constant dense<0.000000e+00> : vector<16x16xf32>
    %205 = tpu.matmul %204, %189, %cst_85 {dimension_numbers = #tpu.dot_dimension_numbers<[1], [0], [0], [1], [0, 0, 1, 1], [], []>} : vector<16x16xbf16>, vector<16x16xbf16>, vector<16x16xf32> -> vector<16x16xf32>
    %206 = vector.extract_strided_slice %181 {offsets = [0, 16], sizes = [16, 16], strides = [1, 1]} : vector<16x32xf32> to vector<16x16xf32>
    %207 = arith.truncf %206 : vector<16x16xf32> to vector<16x16xbf16>
    %208 = vector.extract_strided_slice %182 {offsets = [0, 16], sizes = [16, 16], strides = [1, 1]} : vector<16x32xf32> to vector<16x16xf32>
    %209 = arith.truncf %208 : vector<16x16xf32> to vector<16x16xbf16>
    %210 = vector.extract_strided_slice %183 {offsets = [0, 16], sizes = [16, 16], strides = [1, 1]} : vector<16x32xf32> to vector<16x16xf32>
    %211 = arith.truncf %210 : vector<16x16xf32> to vector<16x16xbf16>
    %212 = tpu.transpose %209, [1, 0] : vector<16x16xbf16> -> vector<16x16xbf16>
    %cst_86 = arith.constant dense<0.000000e+00> : vector<16x16xf32>
    %213 = tpu.matmul %207, %212, %cst_86 {dimension_numbers = #tpu.dot_dimension_numbers<[1], [0], [0], [1], [0, 0, 1, 1], [], []>} : vector<16x16xbf16>, vector<16x16xbf16>, vector<16x16xf32> -> vector<16x16xf32>
    %cst_87 = arith.constant 2.500000e-01 : f32
    %214 = vector.broadcast %cst_87 : f32 to vector<16x16xf32>
    %215 = arith.mulf %213, %214 : vector<16x16xf32>
    %216 = arith.addf %215, %25 : vector<16x16xf32>
    %cst_88 = arith.constant dense<0xFF800000> : vector<16xf32>
    %217 = vector.multi_reduction <maximumf>, %216, %cst_88 [1] : vector<16x16xf32> to vector<16xf32>
    %218 = vector.shape_cast %217 : vector<16xf32> to vector<16x1xf32>
    %219 = vector.broadcast %218 : vector<16x1xf32> to vector<16x16xf32>
    %220 = arith.subf %216, %219 : vector<16x16xf32>
    %221 = math.exp %220 : vector<16x16xf32>
    %cst_89 = arith.constant dense<0.000000e+00> : vector<16xf32>
    %222 = vector.multi_reduction <add>, %221, %cst_89 [1] : vector<16x16xf32> to vector<16xf32>
    %223 = vector.shape_cast %222 : vector<16xf32> to vector<16x1xf32>
    %224 = vector.broadcast %223 : vector<16x1xf32> to vector<16x16xf32>
    %225 = arith.divf %221, %224 : vector<16x16xf32>
    %226 = arith.truncf %225 : vector<16x16xf32> to vector<16x16xbf16>
    %cst_90 = arith.constant dense<0.000000e+00> : vector<16x16xf32>
    %227 = tpu.matmul %226, %211, %cst_90 {dimension_numbers = #tpu.dot_dimension_numbers<[1], [0], [0], [1], [0, 0, 1, 1], [], []>} : vector<16x16xbf16>, vector<16x16xbf16>, vector<16x16xf32> -> vector<16x16xf32>
    %228 = tpu.concatenate %205, %227 in 1 : vector<16x16xf32>, vector<16x16xf32> -> vector<16x32xf32>
    %229 = arith.truncf %228 : vector<16x32xf32> to vector<16x32xbf16>
    %c1_91 = arith.constant 1 : index
    %c0_92 = arith.constant 0 : index
    %c0_93 = arith.constant 0 : index
    %230 = vector.load %arg6[%c1_91, %c0_92, %c0_93] : memref<2x32x32xbf16, #tpu.memory_space<vmem>>, vector<1x32x32xbf16>
    %231 = vector.shape_cast %230 : vector<1x32x32xbf16> to vector<32x32xbf16>
    %cst_94 = arith.constant dense<0.000000e+00> : vector<16x32xf32>
    %232 = tpu.matmul %229, %231, %cst_94 {dimension_numbers = #tpu.dot_dimension_numbers<[1], [0], [0], [1], [0, 0, 1, 1], [], []>} : vector<16x32xbf16>, vector<32x32xbf16>, vector<16x32xf32> -> vector<16x32xf32>
    %c1_95 = arith.constant 1 : index
    %c0_96 = arith.constant 0 : index
    %c0_97 = arith.constant 0 : index
    %233 = vector.load %arg7[%c1_95, %c0_96, %c0_97] : memref<2x1x32xf32, #tpu.memory_space<vmem>>, vector<1x1x32xf32>
    %234 = vector.shape_cast %233 : vector<1x1x32xf32> to vector<1x32xf32>
    %235 = vector.broadcast %234 : vector<1x32xf32> to vector<16x32xf32>
    %236 = arith.addf %232, %235 : vector<16x32xf32>
    %237 = arith.addf %172, %236 : vector<16x32xf32>
    %c1_98 = arith.constant 1 : index
    %c0_99 = arith.constant 0 : index
    %c0_100 = arith.constant 0 : index
    %238 = vector.load %arg8[%c1_98, %c0_99, %c0_100] : memref<2x1x32xf32, #tpu.memory_space<vmem>>, vector<1x1x32xf32>
    %239 = vector.shape_cast %238 : vector<1x1x32xf32> to vector<1x32xf32>
    %c1_101 = arith.constant 1 : index
    %c0_102 = arith.constant 0 : index
    %c0_103 = arith.constant 0 : index
    %240 = vector.load %arg9[%c1_101, %c0_102, %c0_103] : memref<2x1x32xf32, #tpu.memory_space<vmem>>, vector<1x1x32xf32>
    %241 = vector.shape_cast %240 : vector<1x1x32xf32> to vector<1x32xf32>
    %cst_104 = arith.constant dense<0.000000e+00> : vector<16xf32>
    %242 = vector.multi_reduction <add>, %237, %cst_104 [1] : vector<16x32xf32> to vector<16xf32>
    %243 = vector.shape_cast %242 : vector<16xf32> to vector<16x1xf32>
    %cst_105 = arith.constant 3.200000e+01 : f32
    %244 = vector.broadcast %cst_105 : f32 to vector<16x1xf32>
    %245 = arith.divf %243, %244 : vector<16x1xf32>
    %246 = vector.broadcast %245 : vector<16x1xf32> to vector<16x32xf32>
    %247 = arith.subf %237, %246 : vector<16x32xf32>
    %248 = arith.mulf %247, %247 : vector<16x32xf32>
    %cst_106 = arith.constant dense<0.000000e+00> : vector<16xf32>
    %249 = vector.multi_reduction <add>, %248, %cst_106 [1] : vector<16x32xf32> to vector<16xf32>
    %250 = vector.shape_cast %249 : vector<16xf32> to vector<16x1xf32>
    %cst_107 = arith.constant 3.200000e+01 : f32
    %251 = vector.broadcast %cst_107 : f32 to vector<16x1xf32>
    %252 = arith.divf %250, %251 : vector<16x1xf32>
    %253 = vector.broadcast %245 : vector<16x1xf32> to vector<16x32xf32>
    %254 = arith.subf %237, %253 : vector<16x32xf32>
    %cst_108 = arith.constant 9.99999996E-13 : f32
    %255 = vector.broadcast %cst_108 : f32 to vector<16x1xf32>
    %256 = arith.addf %252, %255 : vector<16x1xf32>
    %257 = math.rsqrt %256 : vector<16x1xf32>
    %258 = vector.broadcast %257 : vector<16x1xf32> to vector<16x32xf32>
    %259 = arith.mulf %254, %258 : vector<16x32xf32>
    %260 = vector.broadcast %239 : vector<1x32xf32> to vector<16x32xf32>
    %261 = arith.mulf %259, %260 : vector<16x32xf32>
    %262 = vector.broadcast %241 : vector<1x32xf32> to vector<16x32xf32>
    %263 = arith.addf %261, %262 : vector<16x32xf32>
    %264 = arith.truncf %263 : vector<16x32xf32> to vector<16x32xbf16>
    %c1_109 = arith.constant 1 : index
    %c0_110 = arith.constant 0 : index
    %c0_111 = arith.constant 0 : index
    %265 = vector.load %arg10[%c1_109, %c0_110, %c0_111] : memref<2x32x64xbf16, #tpu.memory_space<vmem>>, vector<1x32x64xbf16>
    %266 = vector.shape_cast %265 : vector<1x32x64xbf16> to vector<32x64xbf16>
    %cst_112 = arith.constant dense<0.000000e+00> : vector<16x64xf32>
    %267 = tpu.matmul %264, %266, %cst_112 {dimension_numbers = #tpu.dot_dimension_numbers<[1], [0], [0], [1], [0, 0, 1, 1], [], []>} : vector<16x32xbf16>, vector<32x64xbf16>, vector<16x64xf32> -> vector<16x64xf32>
    %c1_113 = arith.constant 1 : index
    %c0_114 = arith.constant 0 : index
    %c0_115 = arith.constant 0 : index
    %268 = vector.load %arg11[%c1_113, %c0_114, %c0_115] : memref<2x1x64xf32, #tpu.memory_space<vmem>>, vector<1x1x64xf32>
    %269 = vector.shape_cast %268 : vector<1x1x64xf32> to vector<1x64xf32>
    %270 = vector.broadcast %269 : vector<1x64xf32> to vector<16x64xf32>
    %271 = arith.addf %267, %270 : vector<16x64xf32>
    %cst_116 = arith.constant 5.000000e-01 : f32
    %272 = vector.broadcast %cst_116 : f32 to vector<16x64xf32>
    %273 = arith.mulf %272, %271 : vector<16x64xf32>
    %cst_117 = arith.constant 4.471500e-02 : f32
    %274 = vector.broadcast %cst_117 : f32 to vector<16x64xf32>
    %275 = arith.mulf %274, %271 : vector<16x64xf32>
    %276 = arith.mulf %275, %271 : vector<16x64xf32>
    %277 = arith.mulf %276, %271 : vector<16x64xf32>
    %278 = arith.addf %271, %277 : vector<16x64xf32>
    %cst_118 = arith.constant 0.797884583 : f32
    %279 = vector.broadcast %cst_118 : f32 to vector<16x64xf32>
    %280 = arith.mulf %279, %278 : vector<16x64xf32>
    %281 = math.tanh %280 : vector<16x64xf32>
    %cst_119 = arith.constant 1.000000e+00 : f32
    %282 = vector.broadcast %cst_119 : f32 to vector<16x64xf32>
    %283 = arith.addf %282, %281 : vector<16x64xf32>
    %284 = arith.mulf %273, %283 : vector<16x64xf32>
    %285 = arith.truncf %284 : vector<16x64xf32> to vector<16x64xbf16>
    %c1_120 = arith.constant 1 : index
    %c0_121 = arith.constant 0 : index
    %c0_122 = arith.constant 0 : index
    %286 = vector.load %arg12[%c1_120, %c0_121, %c0_122] : memref<2x64x32xbf16, #tpu.memory_space<vmem>>, vector<1x64x32xbf16>
    %287 = vector.shape_cast %286 : vector<1x64x32xbf16> to vector<64x32xbf16>
    %cst_123 = arith.constant dense<0.000000e+00> : vector<16x32xf32>
    %288 = tpu.matmul %285, %287, %cst_123 {dimension_numbers = #tpu.dot_dimension_numbers<[1], [0], [0], [1], [0, 0, 1, 1], [], []>} : vector<16x64xbf16>, vector<64x32xbf16>, vector<16x32xf32> -> vector<16x32xf32>
    %c1_124 = arith.constant 1 : index
    %c0_125 = arith.constant 0 : index
    %c0_126 = arith.constant 0 : index
    %289 = vector.load %arg13[%c1_124, %c0_125, %c0_126] : memref<2x1x32xf32, #tpu.memory_space<vmem>>, vector<1x1x32xf32>
    %290 = vector.shape_cast %289 : vector<1x1x32xf32> to vector<1x32xf32>
    %291 = vector.broadcast %290 : vector<1x32xf32> to vector<16x32xf32>
    %292 = arith.addf %288, %291 : vector<16x32xf32>
    %293 = arith.addf %263, %292 : vector<16x32xf32>
    %c1_127 = arith.constant 1 : index
    %c0_128 = arith.constant 0 : index
    %c0_129 = arith.constant 0 : index
    %294 = vector.load %arg14[%c1_127, %c0_128, %c0_129] : memref<2x1x32xf32, #tpu.memory_space<vmem>>, vector<1x1x32xf32>
    %295 = vector.shape_cast %294 : vector<1x1x32xf32> to vector<1x32xf32>
    %c1_130 = arith.constant 1 : index
    %c0_131 = arith.constant 0 : index
    %c0_132 = arith.constant 0 : index
    %296 = vector.load %arg15[%c1_130, %c0_131, %c0_132] : memref<2x1x32xf32, #tpu.memory_space<vmem>>, vector<1x1x32xf32>
    %297 = vector.shape_cast %296 : vector<1x1x32xf32> to vector<1x32xf32>
    %cst_133 = arith.constant dense<0.000000e+00> : vector<16xf32>
    %298 = vector.multi_reduction <add>, %293, %cst_133 [1] : vector<16x32xf32> to vector<16xf32>
    %299 = vector.shape_cast %298 : vector<16xf32> to vector<16x1xf32>
    %cst_134 = arith.constant 3.200000e+01 : f32
    %300 = vector.broadcast %cst_134 : f32 to vector<16x1xf32>
    %301 = arith.divf %299, %300 : vector<16x1xf32>
    %302 = vector.broadcast %301 : vector<16x1xf32> to vector<16x32xf32>
    %303 = arith.subf %293, %302 : vector<16x32xf32>
    %304 = arith.mulf %303, %303 : vector<16x32xf32>
    %cst_135 = arith.constant dense<0.000000e+00> : vector<16xf32>
    %305 = vector.multi_reduction <add>, %304, %cst_135 [1] : vector<16x32xf32> to vector<16xf32>
    %306 = vector.shape_cast %305 : vector<16xf32> to vector<16x1xf32>
    %cst_136 = arith.constant 3.200000e+01 : f32
    %307 = vector.broadcast %cst_136 : f32 to vector<16x1xf32>
    %308 = arith.divf %306, %307 : vector<16x1xf32>
    %309 = vector.broadcast %301 : vector<16x1xf32> to vector<16x32xf32>
    %310 = arith.subf %293, %309 : vector<16x32xf32>
    %cst_137 = arith.constant 9.99999996E-13 : f32
    %311 = vector.broadcast %cst_137 : f32 to vector<16x1xf32>
    %312 = arith.addf %308, %311 : vector<16x1xf32>
    %313 = math.rsqrt %312 : vector<16x1xf32>
    %314 = vector.broadcast %313 : vector<16x1xf32> to vector<16x32xf32>
    %315 = arith.mulf %310, %314 : vector<16x32xf32>
    %316 = vector.broadcast %295 : vector<1x32xf32> to vector<16x32xf32>
    %317 = arith.mulf %315, %316 : vector<16x32xf32>
    %318 = vector.broadcast %297 : vector<1x32xf32> to vector<16x32xf32>
    %319 = arith.addf %317, %318 : vector<16x32xf32>
    %320 = arith.truncf %319 : vector<16x32xf32> to vector<16x32xbf16>
    %c0_138 = arith.constant 0 : index
    %c0_139 = arith.constant 0 : index
    %321 = vector.load %arg16[%c0_138, %c0_139] : memref<32x128xbf16, #tpu.memory_space<vmem>>, vector<32x128xbf16>
    %cst_140 = arith.constant dense<0.000000e+00> : vector<16x128xf32>
    %322 = tpu.matmul %320, %321, %cst_140 {dimension_numbers = #tpu.dot_dimension_numbers<[1], [0], [0], [1], [0, 0, 1, 1], [], []>} : vector<16x32xbf16>, vector<32x128xbf16>, vector<16x128xf32> -> vector<16x128xf32>
    %c0_141 = arith.constant 0 : index
    %c0_142 = arith.constant 0 : index
    %323 = vector.load %arg17[%c0_141, %c0_142] : memref<1x128xf32, #tpu.memory_space<vmem>>, vector<1x128xf32>
    %324 = vector.broadcast %323 : vector<1x128xf32> to vector<16x128xf32>
    %325 = arith.addf %322, %324 : vector<16x128xf32>
    %c0_143 = arith.constant 0 : index
    %c0_144 = arith.constant 0 : index
    %326 = vector.load %arg18[%c0_143, %c0_144] : memref<16x128xf32, #tpu.memory_space<vmem>>, vector<16x128xf32>
    tpu.vector_store %arg18[%c0_143, %c0_144], %325 {strides = array<i32>} : memref<16x128xf32, #tpu.memory_space<vmem>>, vector<16x128xf32>,
    return
  }
}

</mosaic_0001>

<bundles_post_ra>
// kernel: fused_logits.1
= control target key start
LH: loop header
LB: loop body
LE: loop exit
PB: predicated region body
PF: predicated region fallthrough
CT: control target
= control target key end

     0   :  { %vm64_vm0 = vcmask 261120   ;;  %v1875_v15 = vmov 0.0   ;;  %vm1876_vm1 = vmmov 0   ;;  %s1879_s30 = smov 112   ;;  %vm182_vm2 = vcmask 130048   ;;  %s1881_s22 = smov 48   ;;  %s2300_s0 = inlined_call_operand.vmem [shape: f32[16,32], index: 0, kind: input, shape index: {}]   ;;  %s2301_s4 = inlined_call_operand.vmem [shape: bf16[2,32,96], index: 4, kind: input, shape index: {}]   ;;  %s2302_s2 = inlined_call_operand.vmem [shape: f32[1,32], index: 2, kind: input, shape index: {}]   ;;  %s2303_s3 = inlined_call_operand.vmem [shape: f32[1,32], index: 3, kind: input, shape index: {}]   ;;  %s2304_s5 = inlined_call_operand.vmem [shape: f32[2,1,96], index: 5, kind: input, shape index: {}]   ;;  %s2305_s1 = inlined_call_operand.vmem [shape: f32[16,16], index: 1, kind: input, shape index: {}]   ;;  %s2306_s6 = inlined_call_operand.vmem [shape: bf16[2,32,32], index: 6, kind: input, shape index: {}]   ;;  %s2307_s7 = inlined_call_operand.vmem [shape: f32[2,1,32], index: 7, kind: input, shape index: {}]   ;;  %s2308_s10 = inlined_call_operand.vmem [shape: bf16[2,32,64], index: 10, kind: input, shape index: {}]   ;;  %s2309_s8 = inlined_call_operand.vmem [shape: f32[2,1,32], index: 8, kind: input, shape index: {}]   ;;  %s2310_s9 = inlined_call_operand.vmem [shape: f32[2,1,32], index: 9, kind: input, shape index: {}]   ;;  %s2311_s12 = inlined_call_operand.vmem [shape: bf16[2,64,32], index: 12, kind: input, shape index: {}]   ;;  %s2312_s11 = inlined_call_operand.vmem [shape: f32[2,1,64], index: 11, kind: input, shape index: {}]   ;;  %s2313_s13 = inlined_call_operand.vmem [shape: f32[2,1,32], index: 13, kind: input, shape index: {}]   ;;  %s2314_s14 = inlined_call_operand.vmem [shape: f32[2,1,32], index: 14, kind: input, shape index: {}]   ;;  %s2315_s15 = inlined_call_operand.vmem [shape: f32[2,1,32], index: 15, kind: input, shape index: {}]   ;;  %s2316_s16 = inlined_call_operand.vmem [shape: bf16[32,128], index: 16, kind: input, shape index: {}]   ;;  %s2317_s17 = inlined_call_operand.vmem [shape: f32[1,128], index: 17, kind: input, shape index: {}]   ;;  %s2318_s18 = inlined_call_operand.vmem [shape: f32[16,128], index: 18, kind: output, shape index: {}]  }
   0x1   :  { %2321 = sst [smem:[#allocation2_spill]] %s2300_s0  ;;  %1647 = vmatprep.subr.bf16.mxu0 %v1875_v15  ;;  %1655 = vmatprep.subr.bf16.mxu1 %v1875_v15  ;;  %v1515_v29 = vld [vmem:[%s2303_s3] ss:$0 sm:$0xff]  ;;  %s1877_s3 = smov 80   ;;  %v2047_v52 = vld [vmem:[%s2305_s1 + $0x8] sm:$0xff]  ;;  %vm679_vm3 = vcmask 523264  }
   0x2   :  { %2322 = sst [smem:[#allocation3_spill]] %s2301_s4  ;;  %s2324_s29 = sld [smem:[#allocation2_spill]]  ;;  %1651 = vmatprep.mubr.msk.bf16.mxu0 %vm1876_vm1, %v1875_v15  ;;  %1657 = vmatprep.mubr.msk.bf16.mxu1 %vm1876_vm1, %v1875_v15  ;;  %v1516_v34 = vld [vmem:[%s2304_s5] ss:$0 sm:$0xff] }
   0x3   :  { %2323 = sst [smem:[#allocation4_spill]] %s2302_s2  ;;  %s2325_s20 = sld [smem:[#allocation3_spill]]  ;;  %v2042_v48 = vld [vmem:[%s2305_s1] sm:$0xff] }
   0x4   :  { %s2326_s24 = sld [smem:[#allocation4_spill]]  ;;  %s1880_s1 = smov 64  }
   0x5   :  { %s1882_s26 = smov 16  }
   0x8   :  { %v60_v0 = vld [vmem:[%s2324_s29] sm:$0xff]  ;;  %v61_v1 = vld [vmem:[%s2324_s29 + $0x8] sm:$0xff]  ;;  %s1878_s29 = smov 96  }
   0x9   :  { %v65_v2 = vsel %vm64_vm0, %v60_v0, 0.0  ;;  %v68_v3 = vsel %vm64_vm0, %v61_v1, 0.0  ;;  %v1793_v14 = vld [vmem:[%s2325_s20] sm:$0xff]   ;;  %v1794_v16 = vld [vmem:[%s2325_s20 + $0x8] sm:$0xff]  }
   0xa   :  { %66 = vadd.xlane.f32.xlu0 %v65_v2  ;;  %1648 = vmatpush3.bf16.msra.mxu0 %v1793_v14  ;;  %v1514_v25 = vld [vmem:[%s2326_s24] ss:$0 sm:$0xff] }
   0xb   :  { %1649 = vmatprep.subr.bf16.mxu0 %v1875_v15 }
   0xe   :  { %69 = vadd.xlane.f32.xlu0 %v68_v3  ;;  %1650 = vmatpush3.bf16.msra.mxu0 %v1794_v16 }
   0xf   :  { %1661 = vmatprep.subr.bf16.mxu0 %v1875_v15 }
  0x97   :  { %v67_v4 = vpop.xlane.xlu0 %66 }
  0x98   :  { %v72_v5 = vmul.f32 0.03125, %v67_v4 }
  0x9a   :  { %v74_v6 = vsub.f32 %v60_v0, %v72_v5 }
  0x9b   :  { %v70_v7 = vpop.xlane.xlu0 %69 }
  0x9c   :  { %v73_v8 = vmul.f32 0.03125, %v70_v7  ;;  %v76_v9 = vmul.f32 %v74_v6, %v74_v6 }
  0x9e   :  { %v75_v10 = vsub.f32 %v61_v1, %v73_v8  ;;  %v78_v11 = vsel %vm64_vm0, %v76_v9, 0.0 }
  0x9f   :  { %79 = vadd.xlane.f32.xlu1 %v78_v11 }
  0xa0   :  { %v77_v12 = vmul.f32 %v75_v10, %v75_v10 }
  0xa2   :  { %v81_v13 = vsel %vm64_vm0, %v77_v12, 0.0 }
  0xa3   :  { %82 = vadd.xlane.f32.xlu1 %v81_v13 }
 0x12c   :  { %v80_v17 = vpop.xlane.xlu1 %79 }
 0x12d   :  { %v84_v18 = vmul.f32 0.03125, %v80_v17 }
 0x12f   :  { %v86_v19 = vadd.f32 1e-12, %v84_v18 }
 0x130   :  { %v83_v20 = vpop.xlane.xlu1 %82 }
 0x131   :  { %1815 = vrsqrt.f32 %v86_v19  ;;  %v85_v21 = vmul.f32 0.03125, %v83_v20 }
 0x133   :  { %v87_v22 = vadd.f32 1e-12, %v85_v21 }
 0x135   :  { %1817 = vrsqrt.f32 %v87_v22 }
 0x13b   :  { %v1816_v23 = vpop.eup %1815 }
 0x13c   :  { %v90_v24 = vmul.f32 %v1816_v23, %v74_v6 }
 0x13e   :  { %v98_v28 = vmul.f32 %v1514_v25, %v90_v24 }
 0x13f   :  { %v1818_v26 = vpop.eup %1817 }
 0x140   :  { %v91_v27 = vmul.f32 %v1818_v26, %v75_v10  ;;  %v2008_v31 = vadd.f32 %v1515_v29, %v98_v28 }
 0x142   :  { %v99_v30 = vmul.f32 %v1514_v25, %v91_v27 }
 0x144   :  { %v2010_v32 = vadd.f32 %v1515_v29, %v99_v30 }
 0x146   :  { %v110_v33 = vpack.c.bf16 %v2010_v32, %v2008_v31 }
 0x148   :  { %1652 = vmatmul.mubr.msk.bf16.vlgmr.msra.gmra.mrb[0].mxu0 %vm64_vm0, %v110_v33 }
 0x149   :  { %1663 = vmatprep.mubr.msk.bf16.mxu0 %vm1876_vm1, %v1875_v15 }
 0x21b   :  { %v171_v35 = vpop.f32.mrb[0].mxu0 }
 0x21c   :  { %v1653_v36 = vpop.f32.mrb[1].mxu0  ;;  %v172_v38 = vadd.f32 %v1516_v34, %v171_v35 }
 0x21d   :  { %v174_v37 = vpop.f32.mrb[2].mxu0 }
 0x21e   :  { %v175_v39 = vadd.f32 %v1516_v34, %v174_v37  ;;  %v1654_v40 = vpop.f32.mrb[3].mxu0 }
 0x220   :  { %v2020_v41 = vpack.c.bf16 %v175_v39, %v172_v38 }
 0x222   :  { %306 = vrot.lane.b32.xlu1 %v2020_v41, %s1877_s3  ;;  %180 = vrot.lane.b32.xlu0 %v2020_v41, %s1878_s29 }
 0x226   :  { %304 = vrot.lane.b32.xlu1 %v2020_v41, %s1879_s30 }
 0x294   :  { %v181_v42 = vpop.permute.xlu0 %180  ;;  %v307_v44 = vpop.permute.xlu1 %306 }
 0x295   :  { %v187_v43 = vsel %vm182_vm2, %v181_v42, 0  ;;  %v312_v45 = vsel %vm182_vm2, %v307_v44, 0  ;;  %v1795_v44 = vld [vmem:[%s2306_s6] sm:$0xff]  }
 0x296   :  { %1656 = vmatpush3.bf16.xpose.msra.mxu1 %v187_v43 }
 0x297   :  { %1667 = vmatprep.subr.bf16.mxu1 %v1875_v15 }
 0x298   :  { %v305_v46 = vpop.permute.xlu1 %304 }
 0x29d   :  { %1658 = vmatmul.mubr.msk.bf16.vlgmr.msra.gmra.mrb[0].mxu1 %vm182_vm2, %v2020_v41 }
 0x29e   :  { %1668 = vmatpush3.bf16.xpose.msra.mxu1 %v312_v45  ;;  %1669 = vmatprep.mubr.msk.bf16.mxu1 %vm1876_vm1, %v1875_v15 }
 0x29f   :  { %1679 = vmatprep.subr.bf16.mxu1 %v1875_v15 }
 0x2a5   :  { %1670 = vmatmul.mubr.msk.bf16.vlgmr.msra.gmra.mrb[4].mxu1 %vm182_vm2, %v305_v46 }
 0x2a6   :  { %1683 = vmatprep.mubr.msk.bf16.mxu1 %vm1876_vm1, %v1875_v15  ;;  %1680 = vmatpush3.bf16.msra.mxu1 %v1795_v44  ;;  %v1530_v44 = vld [vmem:[%s2312_s11] ss:$0 sm:$0xff] }
 0x2a7   :  { %1681 = vmatprep.subr.bf16.mxu1 %v1875_v15 }
 0x370   :  { %v223_v47 = vpop.f32.mrb[0].mxu1 }
 0x371   :  { %v230_v49 = vmul.f32 0.25, %v223_v47  ;;  %v1659_v50 = vpop.f32.mrb[1].mxu1 }
 0x372   :  { %v226_v51 = vpop.f32.mrb[2].mxu1  ;;  %v1796_v50 = vld [vmem:[%s2306_s6 + $0x8] sm:$0xff]  }
 0x373   :  { %v231_v53 = vmul.f32 0.25, %v226_v51  ;;  %v1660_v54 = vpop.f32.mrb[3].mxu1  ;;  %v232_v55 = vadd.f32 %v230_v49, %v2042_v48  ;;  %1682 = vmatpush3.bf16.msra.mxu1 %v1796_v50 }
 0x374   :  { %1695 = vmatprep.subr.bf16.mxu1 %v1875_v15 }
 0x375   :  { %v234_v56 = vsel %vm182_vm2, %v232_v55, -inf  ;;  %v233_v57 = vadd.f32 %v231_v53, %v2047_v52 }
 0x376   :  { %235 = vmax.xlane.f32.xlu1 %v234_v56 }
 0x377   :  { %v237_v58 = vsel %vm182_vm2, %v233_v57, -inf }
 0x378   :  { %238 = vmax.xlane.f32.xlu0 %v237_v58  ;;  %v348_v59 = vpop.f32.mrb[4].mxu1 }
 0x379   :  { %v355_v60 = vmul.f32 0.25, %v348_v59  ;;  %v1671_v61 = vpop.f32.mrb[5].mxu1 }
 0x37a   :  { %v351_v62 = vpop.f32.mrb[6].mxu1 }
 0x37b   :  { %v356_v63 = vmul.f32 0.25, %v351_v62  ;;  %v1672_v0 = vpop.f32.mrb[7].mxu1  ;;  %v357_v1 = vadd.f32 %v355_v60, %v2042_v48 }
 0x37d   :  { %v359_v2 = vsel %vm182_vm2, %v357_v1, -inf  ;;  %v358_v3 = vadd.f32 %v356_v63, %v2047_v52  ;;  %v1524_v63 = vld [vmem:[%s2307_s7] ss:$0 sm:$0xff] }
 0x37e   :  { %360 = vmax.xlane.f32.xlu0 %v359_v2 }
 0x37f   :  { %v362_v4 = vsel %vm182_vm2, %v358_v3, -inf }
 0x382   :  { %363 = vmax.xlane.f32.xlu0 %v362_v4 }
 0x403   :  { %v236_v5 = vpop.xlane.xlu1 %235 }
 0x404   :  { %v240_v6 = vsub.f32 %v232_v55, %v236_v5 }
 0x405   :  { %v239_v7 = vpop.xlane.xlu0 %238 }
 0x406   :  { %v242_v8 = vmul.f32 1.442695, %v240_v6  ;;  %v241_v9 = vsub.f32 %v233_v57, %v239_v7 }
 0x408   :  { %1819 = vpow2.f32 %v242_v8  ;;  %v244_v10 = vmul.f32 1.442695, %v241_v9 }
 0x40a   :  { %1821 = vpow2.f32 %v244_v10 }
 0x40b   :  { %v361_v11 = vpop.xlane.xlu0 %360 }
 0x40c   :  { %v365_v12 = vsub.f32 %v357_v1, %v361_v11 }
 0x40e   :  { %v367_v13 = vmul.f32 1.442695, %v365_v12 }
 0x40f   :  { %v364_v14 = vpop.xlane.xlu0 %363 }
 0x410   :  { %1823 = vpow2.f32 %v367_v13  ;;  %v366_v16 = vsub.f32 %v358_v3, %v364_v14 }
 0x412   :  { %v1820_v17 = vpop.eup %1819  ;;  %v369_v18 = vmul.f32 1.442695, %v366_v16 }
 0x413   :  { %v246_v19 = vsel %vm182_vm2, %v1820_v17, 0.0 }
 0x414   :  { %v1822_v20 = vpop.eup %1821  ;;  %1825 = vpow2.f32 %v369_v18  ;;  %247 = vadd.xlane.f32.xlu1 %v246_v19 }
 0x415   :  { %v249_v21 = vsel %vm182_vm2, %v1822_v20, 0.0 }
 0x416   :  { %250 = vadd.xlane.f32.xlu0 %v249_v21 }
 0x41a   :  { %v1824_v22 = vpop.eup %1823 }
 0x41b   :  { %v371_v23 = vsel %vm182_vm2, %v1824_v22, 0.0 }
 0x41c   :  { %372 = vadd.xlane.f32.xlu1 %v371_v23 }
 0x41e   :  { %v1826_v24 = vpop.eup %1825 }
 0x41f   :  { %v374_v25 = vsel %vm182_vm2, %v1826_v24, 0.0 }
 0x420   :  { %375 = vadd.xlane.f32.xlu0 %v374_v25 }
 0x42d   :  { %257 = vrot.lane.b32.xlu1 %v2020_v41, %s1880_s1 }
 0x436   :  { %382 = vrot.lane.b32.xlu0 %v2020_v41, %s1881_s22 }
 0x4a1   :  { %v248_v26 = vpop.xlane.xlu1 %247 }
 0x4a2   :  { %1827 = vrcp.f32 %v248_v26 }
 0x4a3   :  { %v251_v27 = vpop.xlane.xlu0 %250 }
 0x4a4   :  { %1829 = vrcp.f32 %v251_v27 }
 0x4a9   :  { %v373_v28 = vpop.xlane.xlu1 %372 }
 0x4aa   :  { %1831 = vrcp.f32 %v373_v28  ;;  %v1528_v28 = vld [vmem:[%s2309_s8] ss:$0 sm:$0xff] }
 0x4ac   :  { %v1828_v29 = vpop.eup %1827 }
 0x4ad   :  { %v258_v30 = vpop.permute.xlu1 %257  ;;  %v376_v33 = vpop.xlane.xlu0 %375  ;;  %v253_v35 = vmul.f32 %v1828_v29, %v1820_v17 }
 0x4ae   :  { %v1830_v34 = vpop.eup %1829  ;;  %1833 = vrcp.f32 %v376_v33  ;;  %1662 = vmatpush3.bf16.msra.mxu0 %v258_v30 }
 0x4af   :  { %v255_v36 = vmul.f32 %v1830_v34, %v1822_v20  ;;  %1673 = vmatprep.subr.bf16.mxu0 %v1875_v15  ;;  %v1798_v20 = vld [vmem:[%s2308_s10 + $0x8] sm:$0xff]  }
 0x4b1   :  { %v383_v37 = vpop.permute.xlu0 %382  ;;  %v256_v38 = vpack.c.bf16 %v255_v36, %v253_v35  ;;  %v1529_v35 = vld [vmem:[%s2310_s9] ss:$0 sm:$0xff] }
 0x4b3   :  { %1664 = vmatmul.mubr.msk.bf16.vlgmr.msra.gmra.mrb[4].mxu0 %vm182_vm2, %v256_v38 }
 0x4b4   :  { %1674 = vmatpush3.bf16.msra.mxu0 %v383_v37  ;;  %1675 = vmatprep.mubr.msk.bf16.mxu0 %vm1876_vm1, %v1875_v15  ;;  %v1832_v39 = vpop.eup %1831 }
 0x4b5   :  { %1687 = vmatprep.subr.bf16.mxu0 %v1875_v15  ;;  %v378_v41 = vmul.f32 %v1832_v39, %v1824_v22 }
 0x4b8   :  { %v1834_v40 = vpop.eup %1833 }
 0x4b9   :  { %v380_v42 = vmul.f32 %v1834_v40, %v1826_v24  ;;  %v1799_v40 = vld [vmem:[%s2311_s12] sm:$0xff]  }
 0x4bb   :  { %v381_v43 = vpack.c.bf16 %v380_v42, %v378_v41  ;;  %v1800_v41 = vld [vmem:[%s2311_s12 + $0x8] sm:$0xff]   ;;  %v1801_v42 = vld [vmem:[%s2311_s12 + $0x10] sm:$0xff]  }
 0x4bd   :  { %1676 = vmatmul.mubr.msk.bf16.vlgmr.msra.gmra.mrb[8].mxu0 %vm182_vm2, %v381_v43  ;;  %v1802_v43 = vld [vmem:[%s2311_s12 + $0x18] sm:$0xff]  }
 0x4be   :  { %1691 = vmatprep.mubr.msk.bf16.mxu0 %vm1876_vm1, %v1875_v15 }
 0x586   :  { %v297_v45 = vpop.f32.mrb[4].mxu0 }
 0x587   :  { %v1665_v46 = vpop.f32.mrb[5].mxu0 }
 0x588   :  { %v300_v47 = vpop.f32.mrb[6].mxu0 }
 0x589   :  { %v1666_v49 = vpop.f32.mrb[7].mxu0 }
 0x590   :  { %v422_v51 = vpop.f32.mrb[8].mxu0 }
 0x591   :  { %v1677_v53 = vpop.f32.mrb[9].mxu0 }
 0x592   :  { %v425_v54 = vpop.f32.mrb[10].mxu0 }
 0x593   :  { %v1783_v55 = vpack.i.bf16 %v425_v54, %v422_v51  ;;  %v1678_v56 = vpop.f32.mrb[11].mxu0 }
 0x595   :  { %1784 = vrot.lane.b32.xlu1 %v1783_v55, %s1882_s26 }
 0x607   :  { %v1785_v57 = vpop.permute.xlu1 %1784 }
 0x608   :  { %v1787_v58 = vunpack.i.h.bf16 %v1785_v57  ;;  %v1786_v59 = vunpack.i.l.bf16 %v1785_v57 }
 0x60a   :  { %v438_v60 = vsel %vm182_vm2, %v300_v47, %v1787_v58  ;;  %v437_v61 = vsel %vm182_vm2, %v297_v45, %v1786_v59 }
 0x60b   :  { %v439_v62 = vpack.c.bf16 %v438_v60, %v437_v61 }
 0x60d   :  { %1684 = vmatmul.mubr.msk.bf16.vlgmr.msra.gmra.mrb[8].mxu1 %vm64_vm0, %v439_v62 }
 0x60e   :  { %1703 = vmatprep.mubr.msk.bf16.mxu1 %vm1876_vm1, %v1875_v15  ;;  %1696 = vmatpush3.bf16.msra.mxu1 %v1799_v40 }
 0x60f   :  { %1697 = vmatprep.subr.bf16.mxu1 %v1875_v15 }
 0x612   :  { %1698 = vmatpush3.bf16.msra.mxu1 %v1800_v41 }
 0x613   :  { %1699 = vmatprep.subr.bf16.mxu1 %v1875_v15 }
 0x616   :  { %1700 = vmatpush3.bf16.msra.mxu1 %v1801_v42 }
 0x617   :  { %1701 = vmatprep.subr.bf16.mxu1 %v1875_v15 }
 0x61a   :  { %1702 = vmatpush3.bf16.msra.mxu1 %v1802_v43 }
 0x61b   :  { %1721 = vmatprep.subr.bf16.mxu1 %v1875_v15 }
 0x6e0   :  { %v500_v0 = vpop.f32.mrb[8].mxu1 }
 0x6e1   :  { %v501_v1 = vadd.f32 %v1524_v63, %v500_v0  ;;  %v1685_v2 = vpop.f32.mrb[9].mxu1 }
 0x6e2   :  { %v503_v3 = vpop.f32.mrb[10].mxu1 }
 0x6e3   :  { %v504_v4 = vadd.f32 %v1524_v63, %v503_v3  ;;  %v1686_v5 = vpop.f32.mrb[11].mxu1  ;;  %v507_v6 = vadd.f32 %v501_v1, %v2008_v31 }
 0x6e5   :  { %v511_v7 = vsel %vm64_vm0, %v507_v6, 0.0  ;;  %v508_v8 = vadd.f32 %v504_v4, %v2010_v32  ;;  %v1797_v32 = vld [vmem:[%s2308_s10] sm:$0xff]  }
 0x6e6   :  { %512 = vadd.xlane.f32.xlu1 %v511_v7  ;;  %1688 = vmatpush3.bf16.msra.mxu0 %v1797_v32 }
 0x6e7   :  { %v514_v9 = vsel %vm64_vm0, %v508_v8, 0.0  ;;  %1689 = vmatprep.subr.bf16.mxu0 %v1875_v15 }
 0x6e8   :  { %515 = vadd.xlane.f32.xlu0 %v514_v9 }
 0x6ea   :  { %1690 = vmatpush3.bf16.msra.mxu0 %v1798_v20 }
 0x6eb   :  { %1707 = vmatprep.subr.bf16.mxu0 %v1875_v15 }
 0x773   :  { %v513_v10 = vpop.xlane.xlu1 %512 }
 0x774   :  { %v517_v11 = vmul.f32 0.03125, %v513_v10 }
 0x775   :  { %v516_v12 = vpop.xlane.xlu0 %515 }
 0x776   :  { %v519_v13 = vsub.f32 %v507_v6, %v517_v11  ;;  %v518_v14 = vmul.f32 0.03125, %v516_v12 }
 0x778   :  { %v520_v16 = vsub.f32 %v508_v8, %v518_v14  ;;  %v521_v17 = vmul.f32 %v519_v13, %v519_v13  ;;  %v1534_v8 = vld [vmem:[%s2313_s13] ss:$0 sm:$0xff] }
 0x77a   :  { %v523_v18 = vsel %vm64_vm0, %v521_v17, 0.0  ;;  %v522_v19 = vmul.f32 %v520_v16, %v520_v16 }
 0x77b   :  { %524 = vadd.xlane.f32.xlu0 %v523_v18 }
 0x77c   :  { %v526_v31 = vsel %vm64_vm0, %v522_v19, 0.0 }
 0x77d   :  { %527 = vadd.xlane.f32.xlu1 %v526_v31 }
 0x808   :  { %v525_v21 = vpop.xlane.xlu0 %524 }
 0x809   :  { %v529_v22 = vmul.f32 0.03125, %v525_v21 }
 0x80a   :  { %v528_v23 = vpop.xlane.xlu1 %527 }
 0x80b   :  { %v531_v24 = vadd.f32 1e-12, %v529_v22  ;;  %v530_v25 = vmul.f32 0.03125, %v528_v23 }
 0x80d   :  { %1835 = vrsqrt.f32 %v531_v24  ;;  %v532_v26 = vadd.f32 1e-12, %v530_v25 }
 0x80f   :  { %1837 = vrsqrt.f32 %v532_v26 }
 0x817   :  { %v1836_v27 = vpop.eup %1835 }
 0x818   :  { %v535_v29 = vmul.f32 %v1836_v27, %v519_v13 }
 0x819   :  { %v1838_v30 = vpop.eup %1837 }
 0x81a   :  { %v543_v33 = vmul.f32 %v1528_v28, %v535_v29  ;;  %v536_v34 = vmul.f32 %v1838_v30, %v520_v16  ;;  %v1804_v29 = vld [vmem:[%s2325_s20 + $0x18] sm:$0xff]  }
 0x81c   :  { %v544_v36 = vmul.f32 %v1528_v28, %v536_v34  ;;  %v551_v37 = vadd.f32 %v1529_v35, %v543_v33  ;;  %v1803_v28 = vld [vmem:[%s2325_s20 + $0x10] sm:$0xff]  }
 0x81e   :  { %v552_v38 = vadd.f32 %v1529_v35, %v544_v36 }
 0x820   :  { %v553_v39 = vpack.c.bf16 %v552_v38, %v551_v37 }
 0x822   :  { %1692 = vmatmul.mubr.msk.bf16.vlgmr.msra.gmra.mrb[12].mxu0 %vm64_vm0, %v553_v39  ;;  %v1540_v39 = vld [vmem:[%s2314_s14] ss:$0 sm:$0xff] }
 0x823   :  { %1711 = vmatprep.mubr.msk.bf16.mxu0 %vm1876_vm1, %v1875_v15  ;;  %1708 = vmatpush3.bf16.msra.mxu0 %v1803_v28 }
 0x824   :  { %1709 = vmatprep.subr.bf16.mxu0 %v1875_v15 }
 0x827   :  { %1710 = vmatpush3.bf16.msra.mxu0 %v1804_v29 }
 0x828   :  { %1715 = vmatprep.subr.bf16.mxu0 %v1875_v15 }
 0x8f5   :  { %v614_v45 = vpop.f32.mrb[12].mxu0 }
 0x8f6   :  { %v615_v46 = vadd.f32 %v1530_v44, %v614_v45  ;;  %v1693_v47 = vpop.f32.mrb[13].mxu0 }
 0x8f7   :  { %v617_v49 = vpop.f32.mrb[14].mxu0 }
 0x8f8   :  { %v623_v50 = vmul.f32 0.044715, %v615_v46  ;;  %v618_v51 = vadd.f32 %v1530_v44, %v617_v49  ;;  %v1694_v53 = vpop.f32.mrb[15].mxu0  ;;  %v621_v2 = vmul.f32 0.5, %v615_v46  ;;  %v1541_v44 = vld [vmem:[%s2315_s15] ss:$0 sm:$0xff] }
 0x8fa   :  { %v625_v54 = vmul.f32 %v623_v50, %v615_v46  ;;  %v624_v55 = vmul.f32 0.044715, %v618_v51  ;;  %v622_v3 = vmul.f32 0.5, %v618_v51  ;;  %v1547_v50 = vld [vmem:[%s2304_s5 + $0x1] ss:$0 sm:$0xff] }
 0x8fc   :  { %v627_v56 = vmul.f32 %v625_v54, %v615_v46  ;;  %v626_v57 = vmul.f32 %v624_v55, %v618_v51 }
 0x8fe   :  { %v629_v58 = vadd.f32 %v627_v56, %v615_v46  ;;  %v628_v59 = vmul.f32 %v626_v57, %v618_v51 }
 0x900   :  { %v631_v60 = vmul.f32 0.7978846, %v629_v58  ;;  %v630_v61 = vadd.f32 %v628_v59, %v618_v51 }
 0x902   :  { %1839 = vtanh.f32 %v631_v60  ;;  %v632_v62 = vmul.f32 0.7978846, %v630_v61 }
 0x904   :  { %1841 = vtanh.f32 %v632_v62 }
 0x90c   :  { %v1840_v63 = vpop.eup %1839 }
 0x90d   :  { %v635_v0 = vadd.f32 1.0, %v1840_v63 }
 0x90e   :  { %v1842_v1 = vpop.eup %1841 }
 0x90f   :  { %v636_v4 = vadd.f32 1.0, %v1842_v1  ;;  %v637_v5 = vmul.f32 %v635_v0, %v621_v2 }
 0x911   :  { %v638_v6 = vmul.f32 %v636_v4, %v622_v3 }
 0x913   :  { %v639_v7 = vpack.c.bf16 %v638_v6, %v637_v5 }
 0x915   :  { %1704 = vmatmul.mubr.msk.bf16.vlgmr.msra.gmra.mrb[12].mxu1 %vm679_vm3, %v639_v7 }
 0x916   :  { %1723 = vmatprep.mubr.msk.bf16.mxu1 %vm1876_vm1, %v1875_v15 }
 0x9e8   :  { %v717_v9 = vpop.f32.mrb[12].mxu1 }
 0x9e9   :  { %v718_v10 = vadd.f32 %v1534_v8, %v717_v9  ;;  %v1705_v11 = vpop.f32.mrb[13].mxu1 }
 0x9ea   :  { %v720_v12 = vpop.f32.mrb[14].mxu1 }
 0x9eb   :  { %v721_v13 = vadd.f32 %v1534_v8, %v720_v12  ;;  %v1706_v14 = vpop.f32.mrb[15].mxu1  ;;  %v724_v16 = vadd.f32 %v718_v10, %v551_v37 }
 0x9ed   :  { %v728_v17 = vsel %vm64_vm0, %v724_v16, 0.0  ;;  %v725_v18 = vadd.f32 %v721_v13, %v552_v38 }
 0x9ee   :  { %729 = vadd.xlane.f32.xlu0 %v728_v17 }
 0x9ef   :  { %v731_v19 = vsel %vm64_vm0, %v725_v18, 0.0 }
 0x9f0   :  { %732 = vadd.xlane.f32.xlu1 %v731_v19 }
 0xa7b   :  { %v730_v31 = vpop.xlane.xlu0 %729 }
 0xa7c   :  { %v734_v32 = vmul.f32 0.03125, %v730_v31 }
 0xa7d   :  { %v733_v20 = vpop.xlane.xlu1 %732 }
 0xa7e   :  { %v736_v21 = vsub.f32 %v724_v16, %v734_v32  ;;  %v735_v22 = vmul.f32 0.03125, %v733_v20 }
 0xa80   :  { %v737_v23 = vsub.f32 %v725_v18, %v735_v22  ;;  %v738_v24 = vmul.f32 %v736_v21, %v736_v21 }
 0xa82   :  { %v740_v25 = vsel %vm64_vm0, %v738_v24, 0.0  ;;  %v739_v26 = vmul.f32 %v737_v23, %v737_v23 }
 0xa83   :  { %741 = vadd.xlane.f32.xlu0 %v740_v25 }
 0xa84   :  { %v743_v27 = vsel %vm64_vm0, %v739_v26, 0.0 }
 0xa85   :  { %744 = vadd.xlane.f32.xlu1 %v743_v27 }
 0xb10   :  { %v742_v30 = vpop.xlane.xlu0 %741 }
 0xb11   :  { %v746_v33 = vmul.f32 0.03125, %v742_v30 }
 0xb12   :  { %v745_v34 = vpop.xlane.xlu1 %744 }
 0xb13   :  { %v748_v35 = vadd.f32 1e-12, %v746_v33  ;;  %v747_v36 = vmul.f32 0.03125, %v745_v34 }
 0xb15   :  { %1843 = vrsqrt.f32 %v748_v35  ;;  %v749_v37 = vadd.f32 1e-12, %v747_v36 }
 0xb17   :  { %1845 = vrsqrt.f32 %v749_v37 }
 0xb1f   :  { %v1844_v38 = vpop.eup %1843 }
 0xb20   :  { %v752_v40 = vmul.f32 %v1844_v38, %v736_v21 }
 0xb21   :  { %v1846_v41 = vpop.eup %1845 }
 0xb22   :  { %v760_v42 = vmul.f32 %v1540_v39, %v752_v40  ;;  %v753_v43 = vmul.f32 %v1846_v41, %v737_v23 }
 0xb24   :  { %v761_v45 = vmul.f32 %v1540_v39, %v753_v43  ;;  %v2156_v46 = vadd.f32 %v1541_v44, %v760_v42 }
 0xb26   :  { %v2158_v47 = vadd.f32 %v1541_v44, %v761_v45 }
 0xb28   :  { %v770_v49 = vpack.c.bf16 %v2158_v47, %v2156_v46 }
 0xb2a   :  { %1712 = vmatmul.mubr.msk.bf16.vlgmr.msra.gmra.mrb[16].mxu0 %vm64_vm0, %v770_v49 }
 0xb2b   :  { %1717 = vmatprep.mubr.msk.bf16.mxu0 %vm1876_vm1, %v1875_v15 }
 0xbfd   :  { %v833_v51 = vpop.f32.mrb[16].mxu0 }
 0xbfe   :  { %v1713_v53 = vpop.f32.mrb[17].mxu0  ;;  %v834_v55 = vadd.f32 %v1547_v50, %v833_v51 }
 0xbff   :  { %v836_v54 = vpop.f32.mrb[18].mxu0 }
 0xc00   :  { %v837_v56 = vadd.f32 %v1547_v50, %v836_v54  ;;  %v1714_v57 = vpop.f32.mrb[19].mxu0 }
 0xc02   :  { %v2168_v58 = vpack.c.bf16 %v837_v56, %v834_v55 }
 0xc04   :  { %967 = vrot.lane.b32.xlu1 %v2168_v58, %s1877_s3  ;;  %842 = vrot.lane.b32.xlu0 %v2168_v58, %s1878_s29 }
 0xc08   :  { %965 = vrot.lane.b32.xlu1 %v2168_v58, %s1879_s30 }
 0xc76   :  { %v843_v59 = vpop.permute.xlu0 %842  ;;  %v968_v61 = vpop.permute.xlu1 %967 }
 0xc77   :  { %v848_v60 = vsel %vm182_vm2, %v843_v59, 0  ;;  %v973_v62 = vsel %vm182_vm2, %v968_v61, 0  ;;  %v1805_v59 = vld [vmem:[%s2306_s6 + $0x10] sm:$0xff]  }
 0xc78   :  { %1716 = vmatpush3.bf16.xpose.msra.mxu0 %v848_v60 }
 0xc79   :  { %1727 = vmatprep.subr.bf16.mxu0 %v1875_v15 }
 0xc7a   :  { %v966_v63 = vpop.permute.xlu1 %965 }
 0xc7f   :  { %1718 = vmatmul.mubr.msk.bf16.vlgmr.msra.gmra.mrb[20].mxu0 %vm182_vm2, %v2168_v58 }
 0xc80   :  { %1728 = vmatpush3.bf16.xpose.msra.mxu0 %v973_v62  ;;  %1729 = vmatprep.mubr.msk.bf16.mxu0 %vm1876_vm1, %v1875_v15 }
 0xc81   :  { %1739 = vmatprep.subr.bf16.mxu0 %v1875_v15 }
 0xc87   :  { %1730 = vmatmul.mubr.msk.bf16.vlgmr.msra.gmra.mrb[24].mxu0 %vm182_vm2, %v966_v63 }
 0xc88   :  { %1743 = vmatprep.mubr.msk.bf16.mxu0 %vm1876_vm1, %v1875_v15  ;;  %1740 = vmatpush3.bf16.msra.mxu0 %v1805_v59 }
 0xc89   :  { %1741 = vmatprep.subr.bf16.mxu0 %v1875_v15 }
 0xd52   :  { %v884_v0 = vpop.f32.mrb[20].mxu0 }
 0xd53   :  { %v891_v1 = vmul.f32 0.25, %v884_v0  ;;  %v1719_v2 = vpop.f32.mrb[21].mxu0  ;;  %v1806_v0 = vld [vmem:[%s2306_s6 + $0x18] sm:$0xff]  }
 0xd54   :  { %v887_v3 = vpop.f32.mrb[22].mxu0  ;;  %1742 = vmatpush3.bf16.msra.mxu0 %v1806_v0 }
 0xd55   :  { %v892_v4 = vmul.f32 0.25, %v887_v3  ;;  %v1720_v5 = vpop.f32.mrb[23].mxu0  ;;  %v893_v6 = vadd.f32 %v891_v1, %v2042_v48  ;;  %1755 = vmatprep.subr.bf16.mxu0 %v1875_v15 }
 0xd57   :  { %v895_v7 = vsel %vm182_vm2, %v893_v6, -inf  ;;  %v894_v8 = vadd.f32 %v892_v4, %v2047_v52 }
 0xd58   :  { %896 = vmax.xlane.f32.xlu1 %v895_v7 }
 0xd59   :  { %v898_v9 = vsel %vm182_vm2, %v894_v8, -inf }
 0xd5a   :  { %899 = vmax.xlane.f32.xlu0 %v898_v9  ;;  %v1009_v10 = vpop.f32.mrb[24].mxu0 }
 0xd5b   :  { %v1016_v11 = vmul.f32 0.25, %v1009_v10  ;;  %v1731_v12 = vpop.f32.mrb[25].mxu0 }
 0xd5c   :  { %v1012_v13 = vpop.f32.mrb[26].mxu0  ;;  %v1560_v12 = vld [vmem:[%s2307_s7 + $0x1] ss:$0 sm:$0xff] }
 0xd5d   :  { %v1017_v14 = vmul.f32 0.25, %v1012_v13  ;;  %v1732_v16 = vpop.f32.mrb[27].mxu0  ;;  %v1018_v17 = vadd.f32 %v1016_v11, %v2042_v48 }
 0xd5f   :  { %v1020_v18 = vsel %vm182_vm2, %v1018_v17, -inf  ;;  %v1019_v19 = vadd.f32 %v1017_v14, %v2047_v52 }
 0xd60   :  { %1021 = vmax.xlane.f32.xlu0 %v1020_v18 }
 0xd61   :  { %v1023_v31 = vsel %vm182_vm2, %v1019_v19, -inf }
 0xd64   :  { %1024 = vmax.xlane.f32.xlu0 %v1023_v31 }
 0xde5   :  { %v897_v32 = vpop.xlane.xlu1 %896 }
 0xde6   :  { %v901_v20 = vsub.f32 %v893_v6, %v897_v32 }
 0xde7   :  { %v900_v21 = vpop.xlane.xlu0 %899 }
 0xde8   :  { %v903_v22 = vmul.f32 1.442695, %v901_v20  ;;  %v902_v23 = vsub.f32 %v894_v8, %v900_v21 }
 0xdea   :  { %1847 = vpow2.f32 %v903_v22  ;;  %v905_v24 = vmul.f32 1.442695, %v902_v23 }
 0xdec   :  { %1849 = vpow2.f32 %v905_v24 }
 0xded   :  { %v1022_v25 = vpop.xlane.xlu0 %1021 }
 0xdee   :  { %v1026_v26 = vsub.f32 %v1018_v17, %v1022_v25 }
 0xdf0   :  { %v1028_v27 = vmul.f32 1.442695, %v1026_v26 }
 0xdf1   :  { %v1025_v48 = vpop.xlane.xlu0 %1024 }
 0xdf2   :  { %1851 = vpow2.f32 %v1028_v27  ;;  %v1027_v28 = vsub.f32 %v1019_v19, %v1025_v48 }
 0xdf4   :  { %v1848_v29 = vpop.eup %1847  ;;  %v1030_v52 = vmul.f32 1.442695, %v1027_v28 }
 0xdf5   :  { %v907_v30 = vsel %vm182_vm2, %v1848_v29, 0.0 }
 0xdf6   :  { %v1850_v33 = vpop.eup %1849  ;;  %1853 = vpow2.f32 %v1030_v52  ;;  %908 = vadd.xlane.f32.xlu1 %v907_v30  ;;  %v1808_v52 = vld [vmem:[%s2308_s10 + $0x18] sm:$0xff]  }
 0xdf7   :  { %v910_v34 = vsel %vm182_vm2, %v1850_v33, 0.0 }
 0xdf8   :  { %911 = vadd.xlane.f32.xlu0 %v910_v34 }
 0xdfc   :  { %v1852_v35 = vpop.eup %1851 }
 0xdfd   :  { %v1032_v36 = vsel %vm182_vm2, %v1852_v35, 0.0 }
 0xdfe   :  { %1033 = vadd.xlane.f32.xlu1 %v1032_v36 }
 0xe00   :  { %v1854_v37 = vpop.eup %1853 }
 0xe01   :  { %v1035_v38 = vsel %vm182_vm2, %v1854_v37, 0.0 }
 0xe02   :  { %1036 = vadd.xlane.f32.xlu0 %v1035_v38 }
 0xe0f   :  { %918 = vrot.lane.b32.xlu1 %v2168_v58, %s1880_s1 }
 0xe18   :  { %1043 = vrot.lane.b32.xlu0 %v2168_v58, %s1881_s22 }
 0xe83   :  { %v909_v39 = vpop.xlane.xlu1 %908 }
 0xe84   :  { %1855 = vrcp.f32 %v909_v39  ;;  %v1566_v39 = vld [vmem:[%s2309_s8 + $0x1] ss:$0 sm:$0xff] }
 0xe85   :  { %v912_v40 = vpop.xlane.xlu0 %911 }
 0xe86   :  { %1857 = vrcp.f32 %v912_v40 }
 0xe8b   :  { %v1034_v41 = vpop.xlane.xlu1 %1033 }
 0xe8c   :  { %1859 = vrcp.f32 %v1034_v41 }
 0xe8e   :  { %v1856_v42 = vpop.eup %1855 }
 0xe8f   :  { %v919_v43 = vpop.permute.xlu1 %918  ;;  %v1037_v44 = vpop.xlane.xlu0 %1036  ;;  %v914_v49 = vmul.f32 %v1856_v42, %v1848_v29 }
 0xe90   :  { %v1858_v45 = vpop.eup %1857  ;;  %1861 = vrcp.f32 %v1037_v44  ;;  %1722 = vmatpush3.bf16.msra.mxu1 %v919_v43  ;;  %v1567_v44 = vld [vmem:[%s2310_s9 + $0x1] ss:$0 sm:$0xff] }
 0xe91   :  { %v916_v50 = vmul.f32 %v1858_v45, %v1850_v33  ;;  %1733 = vmatprep.subr.bf16.mxu1 %v1875_v15 }
 0xe93   :  { %v1044_v51 = vpop.permute.xlu0 %1043  ;;  %v917_v53 = vpack.c.bf16 %v916_v50, %v914_v49 }
 0xe95   :  { %1724 = vmatmul.mubr.msk.bf16.vlgmr.msra.gmra.mrb[16].mxu1 %vm182_vm2, %v917_v53  ;;  %v1809_v53 = vld [vmem:[%s2311_s12 + $0x20] sm:$0xff]  }
 0xe96   :  { %1734 = vmatpush3.bf16.msra.mxu1 %v1044_v51  ;;  %1735 = vmatprep.mubr.msk.bf16.mxu1 %vm1876_vm1, %v1875_v15  ;;  %v1860_v54 = vpop.eup %1859 }
 0xe97   :  { %1747 = vmatprep.subr.bf16.mxu1 %v1875_v15  ;;  %v1039_v56 = vmul.f32 %v1860_v54, %v1852_v35  ;;  %v1810_v54 = vld [vmem:[%s2311_s12 + $0x28] sm:$0xff]  }
 0xe9a   :  { %v1862_v55 = vpop.eup %1861 }
 0xe9b   :  { %v1041_v57 = vmul.f32 %v1862_v55, %v1854_v37  ;;  %v1811_v55 = vld [vmem:[%s2311_s12 + $0x30] sm:$0xff]  }
 0xe9d   :  { %v1042_v58 = vpack.c.bf16 %v1041_v57, %v1039_v56  ;;  %v1812_v56 = vld [vmem:[%s2311_s12 + $0x38] sm:$0xff]   ;;  %v1573_v57 = vld [vmem:[%s2312_s11 + $0x1] ss:$0 sm:$0xff] }
 0xe9f   :  { %1736 = vmatmul.mubr.msk.bf16.vlgmr.msra.gmra.mrb[20].mxu1 %vm182_vm2, %v1042_v58 }
 0xea0   :  { %1751 = vmatprep.mubr.msk.bf16.mxu1 %vm1876_vm1, %v1875_v15 }
 0xf68   :  { %v958_v60 = vpop.f32.mrb[16].mxu1 }
 0xf69   :  { %v1725_v61 = vpop.f32.mrb[17].mxu1 }
 0xf6a   :  { %v961_v62 = vpop.f32.mrb[18].mxu1 }
 0xf6b   :  { %v1726_v63 = vpop.f32.mrb[19].mxu1 }
 0xf72   :  { %v1083_v1 = vpop.f32.mrb[20].mxu1 }
 0xf73   :  { %v1737_v2 = vpop.f32.mrb[21].mxu1 }
 0xf74   :  { %v1086_v3 = vpop.f32.mrb[22].mxu1 }
 0xf75   :  { %v1788_v4 = vpack.i.bf16 %v1086_v3, %v1083_v1  ;;  %v1738_v5 = vpop.f32.mrb[23].mxu1 }
 0xf77   :  { %1789 = vrot.lane.b32.xlu1 %v1788_v4, %s1882_s26 }
 0xfe9   :  { %v1790_v6 = vpop.permute.xlu1 %1789 }
 0xfea   :  { %v1792_v7 = vunpack.i.h.bf16 %v1790_v6  ;;  %v1791_v8 = vunpack.i.l.bf16 %v1790_v6 }
 0xfec   :  { %v1099_v9 = vsel %vm182_vm2, %v961_v62, %v1792_v7  ;;  %v1098_v10 = vsel %vm182_vm2, %v958_v60, %v1791_v8 }
 0xfed   :  { %v1100_v11 = vpack.c.bf16 %v1099_v9, %v1098_v10 }
 0xfef   :  { %1744 = vmatmul.mubr.msk.bf16.vlgmr.msra.gmra.mrb[28].mxu0 %vm64_vm0, %v1100_v11 }
 0xff0   :  { %1763 = vmatprep.mubr.msk.bf16.mxu0 %vm1876_vm1, %v1875_v15  ;;  %1756 = vmatpush3.bf16.msra.mxu0 %v1809_v53 }
 0xff1   :  { %1757 = vmatprep.subr.bf16.mxu0 %v1875_v15 }
 0xff4   :  { %1758 = vmatpush3.bf16.msra.mxu0 %v1810_v54 }
 0xff5   :  { %1759 = vmatprep.subr.bf16.mxu0 %v1875_v15 }
 0xff8   :  { %1760 = vmatpush3.bf16.msra.mxu0 %v1811_v55 }
 0xff9   :  { %1761 = vmatprep.subr.bf16.mxu0 %v1875_v15 }
 0xffc   :  { %1762 = vmatpush3.bf16.msra.mxu0 %v1812_v56 }
0x10c2   :  { %v1163_v13 = vpop.f32.mrb[28].mxu0 }
0x10c3   :  { %v1164_v14 = vadd.f32 %v1560_v12, %v1163_v13  ;;  %v1745_v16 = vpop.f32.mrb[29].mxu0 }
0x10c4   :  { %v1166_v17 = vpop.f32.mrb[30].mxu0 }
0x10c5   :  { %v1167_v18 = vadd.f32 %v1560_v12, %v1166_v17  ;;  %v1746_v19 = vpop.f32.mrb[31].mxu0  ;;  %v1170_v31 = vadd.f32 %v1164_v14, %v2156_v46 }
0x10c7   :  { %v1176_v32 = vsel %vm64_vm0, %v1170_v31, 0.0  ;;  %v1171_v20 = vadd.f32 %v1167_v18, %v2158_v47  ;;  %v1807_v47 = vld [vmem:[%s2308_s10 + $0x10] sm:$0xff]  }
0x10c8   :  { %1177 = vadd.xlane.f32.xlu1 %v1176_v32  ;;  %1748 = vmatpush3.bf16.msra.mxu1 %v1807_v47 }
0x10c9   :  { %v1179_v21 = vsel %vm64_vm0, %v1171_v20, 0.0  ;;  %1749 = vmatprep.subr.bf16.mxu1 %v1875_v15 }
0x10ca   :  { %1180 = vadd.xlane.f32.xlu0 %v1179_v21 }
0x10cc   :  { %1750 = vmatpush3.bf16.msra.mxu1 %v1808_v52 }
0x10cd   :  { %1767 = vmatprep.subr.bf16.mxu1 %v1875_v15 }
0x1155   :  { %v1178_v22 = vpop.xlane.xlu1 %1177 }
0x1156   :  { %v1182_v23 = vmul.f32 0.03125, %v1178_v22 }
0x1157   :  { %v1181_v24 = vpop.xlane.xlu0 %1180 }
0x1158   :  { %v1184_v25 = vsub.f32 %v1170_v31, %v1182_v23  ;;  %v1183_v26 = vmul.f32 0.03125, %v1181_v24  ;;  %v1586_v31 = vld [vmem:[%s2313_s13 + $0x1] ss:$0 sm:$0xff] }
0x115a   :  { %v1185_v27 = vsub.f32 %v1171_v20, %v1183_v26  ;;  %v1186_v48 = vmul.f32 %v1184_v25, %v1184_v25 }
0x115c   :  { %v1188_v28 = vsel %vm64_vm0, %v1186_v48, 0.0  ;;  %v1187_v29 = vmul.f32 %v1185_v27, %v1185_v27 }
0x115d   :  { %1189 = vadd.xlane.f32.xlu0 %v1188_v28 }
0x115e   :  { %v1191_v46 = vsel %vm64_vm0, %v1187_v29, 0.0 }
0x115f   :  { %1192 = vadd.xlane.f32.xlu1 %v1191_v46 }
0x11ea   :  { %v1190_v30 = vpop.xlane.xlu0 %1189 }
0x11eb   :  { %v1194_v33 = vmul.f32 0.03125, %v1190_v30 }
0x11ec   :  { %v1193_v34 = vpop.xlane.xlu1 %1192 }
0x11ed   :  { %v1196_v35 = vadd.f32 1e-12, %v1194_v33  ;;  %v1195_v36 = vmul.f32 0.03125, %v1193_v34 }
0x11ef   :  { %1863 = vrsqrt.f32 %v1196_v35  ;;  %v1197_v37 = vadd.f32 1e-12, %v1195_v36 }
0x11f1   :  { %1865 = vrsqrt.f32 %v1197_v37  ;;  %v1813_v37 = vld [vmem:[%s2316_s16] sm:$0xff]  }
0x11f9   :  { %v1864_v38 = vpop.eup %1863 }
0x11fa   :  { %v1200_v40 = vmul.f32 %v1864_v38, %v1184_v25  ;;  %v1814_v38 = vld [vmem:[%s2316_s16 + $0x8] sm:$0xff]  }
0x11fb   :  { %v1866_v41 = vpop.eup %1865 }
0x11fc   :  { %v1208_v42 = vmul.f32 %v1566_v39, %v1200_v40  ;;  %v1201_v43 = vmul.f32 %v1866_v41, %v1185_v27 }
0x11fe   :  { %v1209_v45 = vmul.f32 %v1566_v39, %v1201_v43  ;;  %v1216_v49 = vadd.f32 %v1567_v44, %v1208_v42 }
0x1200   :  { %v1217_v50 = vadd.f32 %v1567_v44, %v1209_v45 }
0x1202   :  { %v1218_v51 = vpack.c.bf16 %v1217_v50, %v1216_v49 }
0x1204   :  { %1752 = vmatmul.mubr.msk.bf16.vlgmr.msra.gmra.mrb[24].mxu1 %vm64_vm0, %v1218_v51 }
0x1205   :  { %1771 = vmatprep.mubr.msk.bf16.mxu1 %vm1876_vm1, %v1875_v15  ;;  %1768 = vmatpush3.bf16.msra.mxu1 %v1813_v37 }
0x1206   :  { %1769 = vmatprep.subr.bf16.mxu1 %v1875_v15  ;;  %v1595_v15 = vld [vmem:[%s2315_s15 + $0x1] ss:$0 sm:$0xff] }
0x1209   :  { %1770 = vmatpush3.bf16.msra.mxu1 %v1814_v38 }
0x12d7   :  { %v1281_v58 = vpop.f32.mrb[24].mxu1 }
0x12d8   :  { %v1282_v59 = vadd.f32 %v1573_v57, %v1281_v58  ;;  %v1753_v60 = vpop.f32.mrb[25].mxu1 }
0x12d9   :  { %v1284_v61 = vpop.f32.mrb[26].mxu1 }
0x12da   :  { %v1290_v62 = vmul.f32 0.044715, %v1282_v59  ;;  %v1285_v63 = vadd.f32 %v1573_v57, %v1284_v61  ;;  %v1754_v0 = vpop.f32.mrb[27].mxu1  ;;  %v1288_v13 = vmul.f32 0.5, %v1282_v59 }
0x12dc   :  { %v1292_v1 = vmul.f32 %v1290_v62, %v1282_v59  ;;  %v1291_v2 = vmul.f32 0.044715, %v1285_v63  ;;  %v1289_v14 = vmul.f32 0.5, %v1285_v63 }
0x12de   :  { %v1294_v3 = vmul.f32 %v1292_v1, %v1282_v59  ;;  %v1293_v4 = vmul.f32 %v1291_v2, %v1285_v63 }
0x12e0   :  { %v1296_v5 = vadd.f32 %v1294_v3, %v1282_v59  ;;  %v1295_v6 = vmul.f32 %v1293_v4, %v1285_v63  ;;  %v1596_v59 = vld [vmem:[%s2317_s17] ss:$0 sm:$0xff] }
0x12e2   :  { %v1298_v7 = vmul.f32 0.7978846, %v1296_v5  ;;  %v1297_v8 = vadd.f32 %v1295_v6, %v1285_v63 }
0x12e4   :  { %1867 = vtanh.f32 %v1298_v7  ;;  %v1299_v9 = vmul.f32 0.7978846, %v1297_v8 }
0x12e6   :  { %1869 = vtanh.f32 %v1299_v9 }
0x12ee   :  { %v1868_v10 = vpop.eup %1867 }
0x12ef   :  { %v1302_v11 = vadd.f32 1.0, %v1868_v10 }
0x12f0   :  { %v1870_v12 = vpop.eup %1869 }
0x12f1   :  { %v1303_v16 = vadd.f32 1.0, %v1870_v12  ;;  %v1304_v17 = vmul.f32 %v1302_v11, %v1288_v13 }
0x12f3   :  { %v1305_v18 = vmul.f32 %v1303_v16, %v1289_v14 }
0x12f5   :  { %v1306_v19 = vpack.c.bf16 %v1305_v18, %v1304_v17 }
0x12f7   :  { %1764 = vmatmul.mubr.msk.bf16.vlgmr.msra.gmra.mrb[32].mxu0 %vm679_vm3, %v1306_v19 }
0x13ca   :  { %v1385_v32 = vpop.f32.mrb[32].mxu0 }
0x13cb   :  { %v1386_v20 = vadd.f32 %v1586_v31, %v1385_v32  ;;  %v1765_v21 = vpop.f32.mrb[33].mxu0 }
0x13cc   :  { %v1388_v22 = vpop.f32.mrb[34].mxu0 }
0x13cd   :  { %v1389_v23 = vadd.f32 %v1586_v31, %v1388_v22  ;;  %v1766_v24 = vpop.f32.mrb[35].mxu0  ;;  %v1392_v25 = vadd.f32 %v1386_v20, %v1216_v49  ;;  %v1594_v49 = vld [vmem:[%s2314_s14 + $0x1] ss:$0 sm:$0xff] }
0x13cf   :  { %v1398_v26 = vsel %vm64_vm0, %v1392_v25, 0.0  ;;  %v1393_v27 = vadd.f32 %v1389_v23, %v1217_v50 }
0x13d0   :  { %1399 = vadd.xlane.f32.xlu0 %v1398_v26 }
0x13d1   :  { %v1401_v48 = vsel %vm64_vm0, %v1393_v27, 0.0 }
0x13d2   :  { %1402 = vadd.xlane.f32.xlu1 %v1401_v48 }
0x145d   :  { %v1400_v28 = vpop.xlane.xlu0 %1399 }
0x145e   :  { %v1404_v29 = vmul.f32 0.03125, %v1400_v28 }
0x145f   :  { %v1403_v46 = vpop.xlane.xlu1 %1402 }
0x1460   :  { %v1406_v47 = vsub.f32 %v1392_v25, %v1404_v29  ;;  %v1405_v52 = vmul.f32 0.03125, %v1403_v46 }
0x1462   :  { %v1407_v30 = vsub.f32 %v1393_v27, %v1405_v52  ;;  %v1408_v33 = vmul.f32 %v1406_v47, %v1406_v47 }
0x1464   :  { %v1410_v34 = vsel %vm64_vm0, %v1408_v33, 0.0  ;;  %v1409_v35 = vmul.f32 %v1407_v30, %v1407_v30 }
0x1465   :  { %1411 = vadd.xlane.f32.xlu0 %v1410_v34 }
0x1466   :  { %v1413_v36 = vsel %vm64_vm0, %v1409_v35, 0.0 }
0x1467   :  { %1414 = vadd.xlane.f32.xlu1 %v1413_v36 }
0x14f2   :  { %v1412_v39 = vpop.xlane.xlu0 %1411 }
0x14f3   :  { %v1416_v40 = vmul.f32 0.03125, %v1412_v39 }
0x14f4   :  { %v1415_v41 = vpop.xlane.xlu1 %1414 }
0x14f5   :  { %v1418_v42 = vadd.f32 1e-12, %v1416_v40  ;;  %v1417_v43 = vmul.f32 0.03125, %v1415_v41 }
0x14f7   :  { %1871 = vrsqrt.f32 %v1418_v42  ;;  %v1419_v44 = vadd.f32 1e-12, %v1417_v43 }
0x14f9   :  { %1873 = vrsqrt.f32 %v1419_v44 }
0x1501   :  { %v1872_v45 = vpop.eup %1871 }
0x1502   :  { %v1422_v50 = vmul.f32 %v1872_v45, %v1406_v47 }
0x1503   :  { %v1874_v51 = vpop.eup %1873 }
0x1504   :  { %v1430_v53 = vmul.f32 %v1594_v49, %v1422_v50  ;;  %v1423_v54 = vmul.f32 %v1874_v51, %v1407_v30 }
0x1506   :  { %v1431_v55 = vmul.f32 %v1594_v49, %v1423_v54  ;;  %v1438_v56 = vadd.f32 %v1595_v15, %v1430_v53 }
0x1508   :  { %v1439_v57 = vadd.f32 %v1595_v15, %v1431_v55 }
0x150a   :  { %v1440_v58 = vpack.c.bf16 %v1439_v57, %v1438_v56 }
0x150c   :  { %1772 = vmatmul.mubr.msk.bf16.vlgmr.msra.gmra.mrb[28].mxu1 %vm64_vm0, %v1440_v58 }
0x15df   :  { %v1501_v60 = vpop.f32.mrb[28].mxu1 }
0x15e0   :  { %v1502_v61 = vadd.f32 %v1596_v59, %v1501_v60  ;;  %v1773_v62 = vpop.f32.mrb[29].mxu1 }
0x15e1   :  { %v1504_v63 = vpop.f32.mrb[30].mxu1 }
0x15e2   :  { %1508 = vst [vmem:[%s2318_s18] sm:$0xff] %v1502_v61  ;;  %v1505_v0 = vadd.f32 %v1596_v59, %v1504_v63  ;;  %v1774_v1 = vpop.f32.mrb[31].mxu1 }
0x15e4   :  { %1509 = vst [vmem:[%s2318_s18 + $0x8] sm:$0xff] %v1505_v0 }

</bundles_post_ra>
